<compile_context>
chip_gen: v6e
topology: v6e:2x2x1
jax: 0.10.0
libtpu: 0.0.40
codegen_flags: <defaults>
</compile_context>

<pallas_src>
import functools

import numpy as np
import jax
import jax.numpy as jnp
from jax.experimental import pallas as pl
from jax.experimental.pallas import tpu as pltpu


# ------------------------------ Pallas kernel ------------------------------

def _fused_kernel(meta,
                  lhs1_ref, xflat_ref,
                  w1_ref, b1map_ref,
                  w2s_ref, b2_ref,
                  wh1s_ref, wh2s_ref, wh3_ref, bias_ref,
                  o_ref, x1pad_ref):
    B = meta["B"]
    H1, H2 = meta["H1"], meta["H2"]
    LN1, LN2 = meta["LN1"], meta["LN2"]
    NPAD = meta["NPAD"]
    L1, L2, L3 = meta["L1"], meta["L2"], meta["L3"]
    base_kh = meta["base_kh"]
    NR1 = B * H1          # interior x1 rows
    R2 = B * H2           # x2 rows

    # ---- down1 (with folded 1x1 in_conv): one MXU matmul, output already in
    #      the padded-lane layout (zero W-pad columns come from zero RHS cols).
    x1 = jnp.dot(lhs1_ref[...], w1_ref[...],
                 preferred_element_type=jnp.float32) + b1map_ref[...]

    # Padded x1 scratch: zero the H-pad rows, write the interior (contiguous
    # thanks to the parity-interleaved storage order).
    x1pad_ref[...] = jnp.zeros((NPAD, LN1), jnp.float32)
    x1pad_ref[B:B + NR1, :] = x1

    # ---- down2: 4 per-tap-row matmuls over CONTIGUOUS slices of x1pad.
    acc2 = jnp.zeros((R2, LN2), jnp.float32)
    for kh in range(4):
        s = base_kh[kh]
        lhs = x1pad_ref[s:s + R2, :].astype(jnp.bfloat16)
        rhs = w2s_ref[kh * LN1:(kh + 1) * LN1, :]
        acc2 = acc2 + jnp.dot(lhs, rhs, preferred_element_type=jnp.float32)
    x2 = (acc2 + b2_ref[...]).astype(jnp.bfloat16)           # (B*H2, LN2)

    # ---- head 1 (mu1|logvar1 fused): per output-image-row contributions.
    o1 = jnp.zeros((B, 2 * L1), jnp.float32)
    for r in range(H2):
        o1 = o1 + jnp.dot(x2[r * B:(r + 1) * B, :],
                          wh1s_ref[r * LN2:(r + 1) * LN2, :],
                          preferred_element_type=jnp.float32)

    # ---- head 2 (mu2|logvar2 fused): per x1-image-row contributions.
    o2 = jnp.zeros((B, 2 * L2), jnp.float32)
    for k in range(H1):
        lhs = x1pad_ref[B + k * B:B + (k + 1) * B, :].astype(jnp.bfloat16)
        o2 = o2 + jnp.dot(lhs, wh2s_ref[k * LN1:(k + 1) * LN1, :],
                          preferred_element_type=jnp.float32)

    # ---- head 3 (mu3|logvar3 fused, in_conv folded): acts on the raw input.
    o3 = jnp.dot(xflat_ref[...], wh3_ref[...],
                 preferred_element_type=jnp.float32)

    o_ref[:, 0:2 * L1] = o1 + bias_ref[0:1, 0:2 * L1]
    o_ref[:, 2 * L1:2 * (L1 + L2)] = o2 + bias_ref[1:2, 0:2 * L2]
    o_ref[:, 2 * (L1 + L2):2 * (L1 + L2 + L3)] = o3 + bias_ref[2:3, 0:2 * L3]


def _full_spec(shape):
    # Whole-array block; exempt from the (8,128) divisibility rule.
    return pl.BlockSpec(shape, lambda i: (0,) * len(shape))


# ----------------------- host-side parameter folding -----------------------

def prepare_params(params, batch, in_channels, channels, latent_dims,
                   base_width):
    """Fold/reshuffle all weights once, host-side, into kernel layouts."""
    f32 = np.float32
    B = batch
    Cin = in_channels
    C0, C1, C2 = channels
    H = W = base_width
    H1, W1 = H // 2, W // 2
    H2, W2 = H1 // 2, W1 // 2
    L1, L2, L3 = latent_dims
    assert H % 2 == 0 and W % 2 == 0 and H1 % 2 == 0 and W1 % 2 == 0

    Wp0 = W + 2                     # padded input width
    LN1 = (W1 + 2) * C1             # lanes of a padded x1 image row
    LN2 = W2 * C2                   # lanes of an x2 image row
    K1 = 4 * Wp0 * Cin              # down1 LHS feature width
    NPAD = B * (H1 + 2)             # padded x1 storage rows

    # Parity-interleaved storage order for padded x1 rows.
    n_even = (H1 + 2 + 1) // 2

    def storage(i, b):
        return (i % 2) * n_even * B + (i // 2) * B + b

    pairs = sorted((storage(h1 + 1, 0), h1) for h1 in range(H1))
    h1_seq = [h1 for _, h1 in pairs]
    for p, h1 in enumerate(h1_seq):              # interior rows contiguous
        for b in range(B):
            assert storage(h1 + 1, b) == B + p * B + b
    base_kh = [storage(kh, 0) for kh in range(4)]
    for kh in range(4):                          # down2 tap rows contiguous
        for oh2 in range(H2):
            for b in range(B):
                assert storage(2 * oh2 + kh, b) == base_kh[kh] + oh2 * B + b

    row_perm = np.array([b * H1 + h1 for h1 in h1_seq for b in range(B)],
                        np.int32)

    Win2 = np.asarray(params["in_conv"][0], f32)[:, :, 0, 0]   # (C0, Cin)
    bin_ = np.asarray(params["in_conv"][1], f32)               # (C0,)
    W1w = np.asarray(params["down1"][0], f32)                  # (C1, C0, 4, 4)
    b1 = np.asarray(params["down1"][1], f32)
    W2w = np.asarray(params["down2"][0], f32)                  # (C2, C1, 4, 4)
    b2 = np.asarray(params["down2"][1], f32)

    # in_conv folded into down1 weights / bias-contribution tensor.
    Wf = np.einsum("pqkl,qr->prkl", W1w, Win2)                 # (C1, Cin, 4, 4)
    Tb = np.einsum("pqkl,q->pkl", W1w, bin_)                   # (C1, 4, 4)

    # down1 matmul weight: (K1, LN1), column = padded x1 lane (ow1+1)*C1 + c1.
    w1 = np.zeros((K1, LN1), f32)
    for kh in range(4):
        for ow in range(W1):
            for kw in range(4):
                wpad0 = 2 * ow + kw
                w1[kh * Wp0 * Cin + wpad0 * Cin:
                   kh * Wp0 * Cin + (wpad0 + 1) * Cin,
                   (ow + 1) * C1:(ow + 2) * C1] = Wf[:, :, kh, kw].T

    # Spatially-varying folded bias (zero-pad ring of x0 carries no b_in).
    b1m = np.zeros((H1, W1, C1), f32)
    for h1 in range(H1):
        for ow in range(W1):
            acc = b1.copy()
            for kh in range(4):
                ih = 2 * h1 + kh
                if not (1 <= ih <= H):
                    continue
                for kw in range(4):
                    iw = 2 * ow + kw
                    if 1 <= iw <= W:
                        acc = acc + Tb[:, kh, kw]
            b1m[h1, ow] = acc
    b1lane = np.zeros((H1, LN1), f32)
    b1lane[:, C1:(W1 + 1) * C1] = b1m.reshape(H1, W1 * C1)
    b1map = np.zeros((B * H1, LN1), f32)
    for p, h1 in enumerate(h1_seq):
        for b in range(B):
            b1map[p * B + b] = b1lane[h1]

    # down2 per-kh weights stacked along rows: (4*LN1, LN2).
    w2s = np.zeros((4 * LN1, LN2), f32)
    for kh in range(4):
        for ow2 in range(W2):
            for kw in range(4):
                wpad1 = 2 * ow2 + kw
                w2s[kh * LN1 + wpad1 * C1:kh * LN1 + (wpad1 + 1) * C1,
                    ow2 * C2:(ow2 + 1) * C2] = W2w[:, :, kh, kw].T
    b2row = np.tile(b2, W2)[None, :]                           # (1, LN2)

    # Head 1 (acts on x2 image rows, NCHW .view order folded into columns).
    def _rearr1(Wx):
        t = np.asarray(Wx, f32).reshape(-1, C2, H2, W2)
        return np.transpose(t, (2, 3, 1, 0)).reshape(H2, W2 * C2, -1)

    wh1s = np.concatenate([_rearr1(params["fc_mu1"][0]),
                           _rearr1(params["fc_logvar1"][0])],
                          axis=2).reshape(H2 * LN2, 2 * L1)
    bh1 = np.concatenate([np.asarray(params["fc_mu1"][1], f32),
                          np.asarray(params["fc_logvar1"][1], f32)])

    # Head 2 (acts on padded x1 image rows, row blocks ordered by h1_seq).
    def _rearr2(Wx):
        t = np.asarray(Wx, f32).reshape(-1, C1, H1, W1)
        return np.transpose(t, (2, 3, 1, 0))                   # (H1,W1,C1,L)

    cat2 = np.concatenate([_rearr2(params["fc_mu2"][0]),
                           _rearr2(params["fc_logvar2"][0])], axis=3)
    wh2blk = np.zeros((H1, LN1, 2 * L2), f32)
    wh2blk[:, C1:(W1 + 1) * C1, :] = cat2.reshape(H1, W1 * C1, 2 * L2)
    wh2s = wh2blk[np.array(h1_seq)].reshape(H1 * LN1, 2 * L2)
    bh2 = np.concatenate([np.asarray(params["fc_mu2"][1], f32),
                          np.asarray(params["fc_logvar2"][1], f32)])

    # Head 3 (in_conv folded; acts on raw input in NHWC-flat order).
    def _fold3(Wx, bx):
        t = np.asarray(Wx, f32).reshape(-1, C0, H, W)
        wfold = np.einsum("lchw,cr->hwrl", t, Win2).reshape(H * W * Cin, -1)
        bfold = np.asarray(bx, f32) + np.einsum("lchw,c->l", t, bin_)
        return wfold, bfold

    w3m, b3m = _fold3(*params["fc_mu3"])
    w3l, b3l = _fold3(*params["fc_logvar3"])
    wh3 = np.concatenate([w3m, w3l], axis=1)                   # (H*W*Cin, 2L3)
    bh3 = np.concatenate([b3m, b3l])

    maxw = max(2 * L1, 2 * L2, 2 * L3)
    bias_all = np.zeros((3, maxw), f32)
    bias_all[0, :2 * L1] = bh1
    bias_all[1, :2 * L2] = bh2
    bias_all[2, :2 * L3] = bh3

    return {
        "meta": dict(B=B, Cin=Cin, H=H, W=W, H1=H1, W1=W1, H2=H2, W2=W2,
                     L1=L1, L2=L2, L3=L3, LN1=LN1, LN2=LN2, NPAD=NPAD,
                     base_kh=tuple(base_kh)),
        "row_perm": row_perm,
        "w1": jnp.asarray(w1, jnp.bfloat16),
        "b1map": jnp.asarray(b1map, jnp.float32),
        "w2s": jnp.asarray(w2s, jnp.bfloat16),
        "b2row": jnp.asarray(b2row, jnp.float32),
        "wh1s": jnp.asarray(wh1s, jnp.bfloat16),
        "wh2s": jnp.asarray(wh2s, jnp.bfloat16),
        "wh3": jnp.asarray(wh3, jnp.bfloat16),
        "bias_all": jnp.asarray(bias_all, jnp.float32),
    }


# --------------------------------- forward ---------------------------------

def hvae_lr_encoder_forward(prep, x_nchw):
    meta = prep["meta"]
    B, Cin, H, W = meta["B"], meta["Cin"], meta["H"], meta["W"]
    H1, W1 = meta["H1"], meta["W1"]
    L1, L2, L3 = meta["L1"], meta["L2"], meta["L3"]

    # Minimal XLA glue: raw input -> down1 tap-row layout + NHWC flatten.
    x = jnp.transpose(x_nchw, (0, 2, 3, 1))                    # (B,H,W,Cin)
    xflat = x.reshape(B, H * W * Cin).astype(jnp.bfloat16)
    xp = jnp.pad(x, ((0, 0), (1, 1), (1, 1), (0, 0)))
    xp2 = xp.reshape(B, H + 2, (W + 2) * Cin)
    a = xp2[:, 0:2 * H1, :].reshape(B, H1, 2, (W + 2) * Cin)
    b = xp2[:, 2:2 * H1 + 2, :].reshape(B, H1, 2, (W + 2) * Cin)
    win = jnp.concatenate([a, b], axis=2)                      # (B,H1,4,(W+2)Cin)
    lhs1 = win.reshape(B * H1, 4 * (W + 2) * Cin)
    lhs1 = jnp.take(lhs1, prep["row_perm"], axis=0).astype(jnp.bfloat16)

    ins = (lhs1, xflat, prep["w1"], prep["b1map"], prep["w2s"], prep["b2row"],
           prep["wh1s"], prep["wh2s"], prep["wh3"], prep["bias_all"])
    out_w = 2 * (L1 + L2 + L3)
    out_shape = jax.ShapeDtypeStruct((B, out_w), jnp.float32)

    out = pl.pallas_call(
        functools.partial(_fused_kernel, meta),
        out_shape=out_shape,
        grid=(1,),
        in_specs=[_full_spec(t.shape) for t in ins],
        out_specs=_full_spec((B, out_w)),
        scratch_shapes=[pltpu.VMEM((meta["NPAD"], meta["LN1"]), jnp.float32)],
        compiler_params=pltpu.CompilerParams(
            dimension_semantics=("arbitrary",)),
    )(*ins)

    mu1, lv1 = out[:, :L1], out[:, L1:2 * L1]
    mu2, lv2 = out[:, 2 * L1:2 * L1 + L2], out[:, 2 * L1 + L2:2 * (L1 + L2)]
    mu3 = out[:, 2 * (L1 + L2):2 * (L1 + L2) + L3]
    lv3 = out[:, 2 * (L1 + L2) + L3:]
    return [(mu1, lv1), (mu2, lv2), (mu3, lv3)]


# ------------------------- deterministic parameters ------------------------

def init_params(key, in_channels, channels, latent_dims, base_width):
    def uinit(k, shape, fan_in):
        bound = 1.0 / (fan_in ** 0.5)
        return jax.random.uniform(k, shape, jnp.float32, -bound, bound)

    keys = iter(jax.random.split(key, 18))
    p = {}
    p["in_conv"] = (
        uinit(next(keys), (channels[0], in_channels, 1, 1), in_channels),
        uinit(next(keys), (channels[0],), in_channels),
    )
    p["down1"] = (
        uinit(next(keys), (channels[1], channels[0], 4, 4), channels[0] * 16),
        uinit(next(keys), (channels[1],), channels[0] * 16),
    )
    p["down2"] = (
        uinit(next(keys), (channels[2], channels[1], 4, 4), channels[1] * 16),
        uinit(next(keys), (channels[2],), channels[1] * 16),
    )
    w = base_width // 4
    d1 = channels[2] * w * w
    p["fc_mu1"] = (uinit(next(keys), (latent_dims[0], d1), d1),
                   uinit(next(keys), (latent_dims[0],), d1))
    p["fc_logvar1"] = (uinit(next(keys), (latent_dims[0], d1), d1),
                       uinit(next(keys), (latent_dims[0],), d1))
    w = w * 2
    d2 = channels[1] * w * w
    p["fc_mu2"] = (uinit(next(keys), (latent_dims[1], d2), d2),
                   uinit(next(keys), (latent_dims[1],), d2))
    p["fc_logvar2"] = (uinit(next(keys), (latent_dims[1], d2), d2),
                       uinit(next(keys), (latent_dims[1],), d2))
    w = w * 2
    d3 = channels[0] * w * w
    p["fc_mu3"] = (uinit(next(keys), (latent_dims[2], d3), d3),
                   uinit(next(keys), (latent_dims[2],), d3))
    p["fc_logvar3"] = (uinit(next(keys), (latent_dims[2], d3), d3),
                       uinit(next(keys), (latent_dims[2],), d3))
    return p


# ------------------------- pure-JAX reference (check) ----------------------

def reference_forward(params, x):
    def conv(t, w, b, stride, pad):
        y = jax.lax.conv_general_dilated(
            t, w, (stride, stride), [(pad, pad), (pad, pad)],
            dimension_numbers=("NCHW", "OIHW", "NCHW"))
        return y + b[None, :, None, None]

    x0 = conv(x, *params["in_conv"], 1, 0)
    x1 = conv(x0, *params["down1"], 2, 1)
    x2 = conv(x1, *params["down2"], 2, 1)

    def lin(p, t):
        w, b = p
        return t.reshape(t.shape[0], -1) @ w.T + b

    return [
        (lin(params["fc_mu1"], x2), lin(params["fc_logvar1"], x2)),
        (lin(params["fc_mu2"], x1), lin(params["fc_logvar2"], x1)),
        (lin(params["fc_mu3"], x0), lin(params["fc_logvar3"], x0)),
    ]


# ----------------------------------- main -----------------------------------

if __name__ == "__main__":
    in_channels = 4
    channels = (8, 16, 32)
    latent_dims = (8, 8, 8)
    base_width = 16          # spatial size of the input (H = W = 16)
    batch = 2

    key = jax.random.PRNGKey(0)
    k_params, k_x = jax.random.split(key)
    params = init_params(k_params, in_channels, channels, latent_dims,
                         base_width)
    x = jax.random.normal(k_x, (batch, in_channels, base_width, base_width),
                          jnp.float32)

    prep = prepare_params(params, batch, in_channels, channels, latent_dims,
                          base_width)
    fwd = jax.jit(functools.partial(hvae_lr_encoder_forward, prep))
    out = fwd(x)
    jax.block_until_ready(out)

    # f32 reference; tolerance loosened for bf16 MXU inputs (expected <~1e-2).
    ref = reference_forward(params, x)
    for (mu, lv), (rmu, rlv) in zip(out, ref):
        assert mu.shape == rmu.shape and lv.shape == rlv.shape
        assert jnp.allclose(mu, rmu, rtol=3e-2, atol=3e-2)
        assert jnp.allclose(lv, rlv, rtol=3e-2, atol=3e-2)

    print("KERNEL_OK")
</pallas_src>

<mosaic_0001>
module attributes {stable_mosaic.version = 11 : i64} {
  func.func @_fused_kernel(%arg0: i32, %arg1: memref<16x288xbf16, #tpu.memory_space<vmem>>, %arg2: memref<2x1024xbf16, #tpu.memory_space<vmem>>, %arg3: memref<288x160xbf16, #tpu.memory_space<vmem>>, %arg4: memref<16x160xf32, #tpu.memory_space<vmem>>, %arg5: memref<640x128xbf16, #tpu.memory_space<vmem>>, %arg6: memref<1x128xf32, #tpu.memory_space<vmem>>, %arg7: memref<512x16xbf16, #tpu.memory_space<vmem>>, %arg8: memref<1280x16xbf16, #tpu.memory_space<vmem>>, %arg9: memref<1024x16xbf16, #tpu.memory_space<vmem>>, %arg10: memref<3x16xf32, #tpu.memory_space<vmem>>, %arg11: memref<2x48xf32, #tpu.memory_space<vmem>>, %arg12: memref<20x160xf32, #tpu.memory_space<vmem>>) attributes {dimension_semantics = [#tpu.dimension_semantics<arbitrary>], iteration_bounds = array<i64: 1>, scalar_prefetch = 0 : i64, scratch_operands = 1 : i64, tpu.core_type = #tpu.core_type<tc>, window_params = [{pipeline_mode = #tpu.pipeline_mode<synchronous>, transform_indices = @transform_0, window_bounds = array<i64: 16, 288>}, {pipeline_mode = #tpu.pipeline_mode<synchronous>, transform_indices = @transform_1, window_bounds = array<i64: 2, 1024>}, {pipeline_mode = #tpu.pipeline_mode<synchronous>, transform_indices = @transform_2, window_bounds = array<i64: 288, 160>}, {pipeline_mode = #tpu.pipeline_mode<synchronous>, transform_indices = @transform_3, window_bounds = array<i64: 16, 160>}, {pipeline_mode = #tpu.pipeline_mode<synchronous>, transform_indices = @transform_4, window_bounds = array<i64: 640, 128>}, {pipeline_mode = #tpu.pipeline_mode<synchronous>, transform_indices = @transform_5, window_bounds = array<i64: 1, 128>}, {pipeline_mode = #tpu.pipeline_mode<synchronous>, transform_indices = @transform_6, window_bounds = array<i64: 512, 16>}, {pipeline_mode = #tpu.pipeline_mode<synchronous>, transform_indices = @transform_7, window_bounds = array<i64: 1280, 16>}, {pipeline_mode = #tpu.pipeline_mode<synchronous>, transform_indices = @transform_8, window_bounds = array<i64: 1024, 16>}, {pipeline_mode = #tpu.pipeline_mode<synchronous>, transform_indices = @transform_9, window_bounds = array<i64: 3, 16>}, {pipeline_mode = #tpu.pipeline_mode<synchronous>, transform_indices = @transform_10, window_bounds = array<i64: 2, 48>}]} {
    %c0 = arith.constant 0 : index
    %c0_0 = arith.constant 0 : index
    %0 = vector.load %arg1[%c0, %c0_0] : memref<16x288xbf16, #tpu.memory_space<vmem>>, vector<16x288xbf16>
    %c0_1 = arith.constant 0 : index
    %c0_2 = arith.constant 0 : index
    %1 = vector.load %arg3[%c0_1, %c0_2] : memref<288x160xbf16, #tpu.memory_space<vmem>>, vector<288x160xbf16>
    %cst = arith.constant dense<0.000000e+00> : vector<16x160xf32>
    %2 = tpu.matmul %0, %1, %cst {dimension_numbers = #tpu.dot_dimension_numbers<[1], [0], [0], [1], [0, 0, 1, 1], [], []>} : vector<16x288xbf16>, vector<288x160xbf16>, vector<16x160xf32> -> vector<16x160xf32>
    %c0_3 = arith.constant 0 : index
    %c0_4 = arith.constant 0 : index
    %3 = vector.load %arg4[%c0_3, %c0_4] : memref<16x160xf32, #tpu.memory_space<vmem>>, vector<16x160xf32>
    %4 = arith.addf %2, %3 : vector<16x160xf32>
    %cst_5 = arith.constant 0.000000e+00 : f32
    %5 = vector.broadcast %cst_5 : f32 to vector<20x160xf32>
    %c0_6 = arith.constant 0 : index
    %c0_7 = arith.constant 0 : index
    %6 = vector.load %arg12[%c0_6, %c0_7] : memref<20x160xf32, #tpu.memory_space<vmem>>, vector<20x160xf32>
    tpu.vector_store %arg12[%c0_6, %c0_7], %5 {strides = array<i32>} : memref<20x160xf32, #tpu.memory_space<vmem>>, vector<20x160xf32>,
    %c2 = arith.constant 2 : index
    %c0_8 = arith.constant 0 : index
    %7 = vector.load %arg12[%c2, %c0_8] : memref<20x160xf32, #tpu.memory_space<vmem>>, vector<16x160xf32>
    tpu.vector_store %arg12[%c2, %c0_8], %4 {strides = array<i32>} : memref<20x160xf32, #tpu.memory_space<vmem>>, vector<16x160xf32>,
    %cst_9 = arith.constant 0.000000e+00 : f32
    %8 = vector.broadcast %cst_9 : f32 to vector<8x128xf32>
    %c0_10 = arith.constant 0 : index
    %c0_11 = arith.constant 0 : index
    %9 = vector.load %arg12[%c0_10, %c0_11] : memref<20x160xf32, #tpu.memory_space<vmem>>, vector<8x160xf32>
    %10 = arith.truncf %9 : vector<8x160xf32> to vector<8x160xbf16>
    %c0_12 = arith.constant 0 : index
    %c0_13 = arith.constant 0 : index
    %11 = vector.load %arg5[%c0_12, %c0_13] : memref<640x128xbf16, #tpu.memory_space<vmem>>, vector<160x128xbf16>
    %cst_14 = arith.constant dense<0.000000e+00> : vector<8x128xf32>
    %12 = tpu.matmul %10, %11, %cst_14 {dimension_numbers = #tpu.dot_dimension_numbers<[1], [0], [0], [1], [0, 0, 1, 1], [], []>} : vector<8x160xbf16>, vector<160x128xbf16>, vector<8x128xf32> -> vector<8x128xf32>
    %13 = arith.addf %8, %12 : vector<8x128xf32>
    %c10 = arith.constant 10 : index
    %c0_15 = arith.constant 0 : index
    %14 = vector.load %arg12[%c10, %c0_15] : memref<20x160xf32, #tpu.memory_space<vmem>>, vector<8x160xf32>
    %15 = arith.truncf %14 : vector<8x160xf32> to vector<8x160xbf16>
    %c160 = arith.constant 160 : index
    %c0_16 = arith.constant 0 : index
    %16 = vector.load %arg5[%c160, %c0_16] : memref<640x128xbf16, #tpu.memory_space<vmem>>, vector<160x128xbf16>
    %cst_17 = arith.constant dense<0.000000e+00> : vector<8x128xf32>
    %17 = tpu.matmul %15, %16, %cst_17 {dimension_numbers = #tpu.dot_dimension_numbers<[1], [0], [0], [1], [0, 0, 1, 1], [], []>} : vector<8x160xbf16>, vector<160x128xbf16>, vector<8x128xf32> -> vector<8x128xf32>
    %18 = arith.addf %13, %17 : vector<8x128xf32>
    %c2_18 = arith.constant 2 : index
    %c0_19 = arith.constant 0 : index
    %19 = vector.load %arg12[%c2_18, %c0_19] : memref<20x160xf32, #tpu.memory_space<vmem>>, vector<8x160xf32>
    %20 = arith.truncf %19 : vector<8x160xf32> to vector<8x160xbf16>
    %c320 = arith.constant 320 : index
    %c0_20 = arith.constant 0 : index
    %21 = vector.load %arg5[%c320, %c0_20] : memref<640x128xbf16, #tpu.memory_space<vmem>>, vector<160x128xbf16>
    %cst_21 = arith.constant dense<0.000000e+00> : vector<8x128xf32>
    %22 = tpu.matmul %20, %21, %cst_21 {dimension_numbers = #tpu.dot_dimension_numbers<[1], [0], [0], [1], [0, 0, 1, 1], [], []>} : vector<8x160xbf16>, vector<160x128xbf16>, vector<8x128xf32> -> vector<8x128xf32>
    %23 = arith.addf %18, %22 : vector<8x128xf32>
    %c12 = arith.constant 12 : index
    %c0_22 = arith.constant 0 : index
    %24 = vector.load %arg12[%c12, %c0_22] : memref<20x160xf32, #tpu.memory_space<vmem>>, vector<8x160xf32>
    %25 = arith.truncf %24 : vector<8x160xf32> to vector<8x160xbf16>
    %c480 = arith.constant 480 : index
    %c0_23 = arith.constant 0 : index
    %26 = vector.load %arg5[%c480, %c0_23] : memref<640x128xbf16, #tpu.memory_space<vmem>>, vector<160x128xbf16>
    %cst_24 = arith.constant dense<0.000000e+00> : vector<8x128xf32>
    %27 = tpu.matmul %25, %26, %cst_24 {dimension_numbers = #tpu.dot_dimension_numbers<[1], [0], [0], [1], [0, 0, 1, 1], [], []>} : vector<8x160xbf16>, vector<160x128xbf16>, vector<8x128xf32> -> vector<8x128xf32>
    %28 = arith.addf %23, %27 : vector<8x128xf32>
    %c0_25 = arith.constant 0 : index
    %c0_26 = arith.constant 0 : index
    %29 = vector.load %arg6[%c0_25, %c0_26] : memref<1x128xf32, #tpu.memory_space<vmem>>, vector<1x128xf32>
    %30 = vector.broadcast %29 : vector<1x128xf32> to vector<8x128xf32>
    %31 = arith.addf %28, %30 : vector<8x128xf32>
    %32 = arith.truncf %31 : vector<8x128xf32> to vector<8x128xbf16>
    %cst_27 = arith.constant 0.000000e+00 : f32
    %33 = vector.broadcast %cst_27 : f32 to vector<2x16xf32>
    %34 = vector.extract_strided_slice %32 {offsets = [0, 0], sizes = [2, 128], strides = [1, 1]} : vector<8x128xbf16> to vector<2x128xbf16>
    %c0_28 = arith.constant 0 : index
    %c0_29 = arith.constant 0 : index
    %35 = vector.load %arg7[%c0_28, %c0_29] : memref<512x16xbf16, #tpu.memory_space<vmem>>, vector<128x16xbf16>
    %cst_30 = arith.constant dense<0.000000e+00> : vector<2x16xf32>
    %36 = tpu.matmul %34, %35, %cst_30 {dimension_numbers = #tpu.dot_dimension_numbers<[1], [0], [0], [1], [0, 0, 1, 1], [], []>} : vector<2x128xbf16>, vector<128x16xbf16>, vector<2x16xf32> -> vector<2x16xf32>
    %37 = arith.addf %33, %36 : vector<2x16xf32>
    %38 = vector.extract_strided_slice %32 {offsets = [2, 0], sizes = [2, 128], strides = [1, 1]} : vector<8x128xbf16> to vector<2x128xbf16>
    %c128 = arith.constant 128 : index
    %c0_31 = arith.constant 0 : index
    %39 = vector.load %arg7[%c128, %c0_31] : memref<512x16xbf16, #tpu.memory_space<vmem>>, vector<128x16xbf16>
    %cst_32 = arith.constant dense<0.000000e+00> : vector<2x16xf32>
    %40 = tpu.matmul %38, %39, %cst_32 {dimension_numbers = #tpu.dot_dimension_numbers<[1], [0], [0], [1], [0, 0, 1, 1], [], []>} : vector<2x128xbf16>, vector<128x16xbf16>, vector<2x16xf32> -> vector<2x16xf32>
    %41 = arith.addf %37, %40 : vector<2x16xf32>
    %42 = vector.extract_strided_slice %32 {offsets = [4, 0], sizes = [2, 128], strides = [1, 1]} : vector<8x128xbf16> to vector<2x128xbf16>
    %c256 = arith.constant 256 : index
    %c0_33 = arith.constant 0 : index
    %43 = vector.load %arg7[%c256, %c0_33] : memref<512x16xbf16, #tpu.memory_space<vmem>>, vector<128x16xbf16>
    %cst_34 = arith.constant dense<0.000000e+00> : vector<2x16xf32>
    %44 = tpu.matmul %42, %43, %cst_34 {dimension_numbers = #tpu.dot_dimension_numbers<[1], [0], [0], [1], [0, 0, 1, 1], [], []>} : vector<2x128xbf16>, vector<128x16xbf16>, vector<2x16xf32> -> vector<2x16xf32>
    %45 = arith.addf %41, %44 : vector<2x16xf32>
    %46 = vector.extract_strided_slice %32 {offsets = [6, 0], sizes = [2, 128], strides = [1, 1]} : vector<8x128xbf16> to vector<2x128xbf16>
    %c384 = arith.constant 384 : index
    %c0_35 = arith.constant 0 : index
    %47 = vector.load %arg7[%c384, %c0_35] : memref<512x16xbf16, #tpu.memory_space<vmem>>, vector<128x16xbf16>
    %cst_36 = arith.constant dense<0.000000e+00> : vector<2x16xf32>
    %48 = tpu.matmul %46, %47, %cst_36 {dimension_numbers = #tpu.dot_dimension_numbers<[1], [0], [0], [1], [0, 0, 1, 1], [], []>} : vector<2x128xbf16>, vector<128x16xbf16>, vector<2x16xf32> -> vector<2x16xf32>
    %49 = arith.addf %45, %48 : vector<2x16xf32>
    %cst_37 = arith.constant 0.000000e+00 : f32
    %50 = vector.broadcast %cst_37 : f32 to vector<2x16xf32>
    %c2_38 = arith.constant 2 : index
    %c0_39 = arith.constant 0 : index
    %51 = vector.load %arg12[%c2_38, %c0_39] : memref<20x160xf32, #tpu.memory_space<vmem>>, vector<2x160xf32>
    %52 = arith.truncf %51 : vector<2x160xf32> to vector<2x160xbf16>
    %c0_40 = arith.constant 0 : index
    %c0_41 = arith.constant 0 : index
    %53 = vector.load %arg8[%c0_40, %c0_41] : memref<1280x16xbf16, #tpu.memory_space<vmem>>, vector<160x16xbf16>
    %cst_42 = arith.constant dense<0.000000e+00> : vector<2x16xf32>
    %54 = tpu.matmul %52, %53, %cst_42 {dimension_numbers = #tpu.dot_dimension_numbers<[1], [0], [0], [1], [0, 0, 1, 1], [], []>} : vector<2x160xbf16>, vector<160x16xbf16>, vector<2x16xf32> -> vector<2x16xf32>
    %55 = arith.addf %50, %54 : vector<2x16xf32>
    %c4 = arith.constant 4 : index
    %c0_43 = arith.constant 0 : index
    %56 = vector.load %arg12[%c4, %c0_43] : memref<20x160xf32, #tpu.memory_space<vmem>>, vector<2x160xf32>
    %57 = arith.truncf %56 : vector<2x160xf32> to vector<2x160xbf16>
    %c160_44 = arith.constant 160 : index
    %c0_45 = arith.constant 0 : index
    %58 = vector.load %arg8[%c160_44, %c0_45] : memref<1280x16xbf16, #tpu.memory_space<vmem>>, vector<160x16xbf16>
    %cst_46 = arith.constant dense<0.000000e+00> : vector<2x16xf32>
    %59 = tpu.matmul %57, %58, %cst_46 {dimension_numbers = #tpu.dot_dimension_numbers<[1], [0], [0], [1], [0, 0, 1, 1], [], []>} : vector<2x160xbf16>, vector<160x16xbf16>, vector<2x16xf32> -> vector<2x16xf32>
    %60 = arith.addf %55, %59 : vector<2x16xf32>
    %c6 = arith.constant 6 : index
    %c0_47 = arith.constant 0 : index
    %61 = vector.load %arg12[%c6, %c0_47] : memref<20x160xf32, #tpu.memory_space<vmem>>, vector<2x160xf32>
    %62 = arith.truncf %61 : vector<2x160xf32> to vector<2x160xbf16>
    %c320_48 = arith.constant 320 : index
    %c0_49 = arith.constant 0 : index
    %63 = vector.load %arg8[%c320_48, %c0_49] : memref<1280x16xbf16, #tpu.memory_space<vmem>>, vector<160x16xbf16>
    %cst_50 = arith.constant dense<0.000000e+00> : vector<2x16xf32>
    %64 = tpu.matmul %62, %63, %cst_50 {dimension_numbers = #tpu.dot_dimension_numbers<[1], [0], [0], [1], [0, 0, 1, 1], [], []>} : vector<2x160xbf16>, vector<160x16xbf16>, vector<2x16xf32> -> vector<2x16xf32>
    %65 = arith.addf %60, %64 : vector<2x16xf32>
    %c8 = arith.constant 8 : index
    %c0_51 = arith.constant 0 : index
    %66 = vector.load %arg12[%c8, %c0_51] : memref<20x160xf32, #tpu.memory_space<vmem>>, vector<2x160xf32>
    %67 = arith.truncf %66 : vector<2x160xf32> to vector<2x160xbf16>
    %c480_52 = arith.constant 480 : index
    %c0_53 = arith.constant 0 : index
    %68 = vector.load %arg8[%c480_52, %c0_53] : memref<1280x16xbf16, #tpu.memory_space<vmem>>, vector<160x16xbf16>
    %cst_54 = arith.constant dense<0.000000e+00> : vector<2x16xf32>
    %69 = tpu.matmul %67, %68, %cst_54 {dimension_numbers = #tpu.dot_dimension_numbers<[1], [0], [0], [1], [0, 0, 1, 1], [], []>} : vector<2x160xbf16>, vector<160x16xbf16>, vector<2x16xf32> -> vector<2x16xf32>
    %70 = arith.addf %65, %69 : vector<2x16xf32>
    %c10_55 = arith.constant 10 : index
    %c0_56 = arith.constant 0 : index
    %71 = vector.load %arg12[%c10_55, %c0_56] : memref<20x160xf32, #tpu.memory_space<vmem>>, vector<2x160xf32>
    %72 = arith.truncf %71 : vector<2x160xf32> to vector<2x160xbf16>
    %c640 = arith.constant 640 : index
    %c0_57 = arith.constant 0 : index
    %73 = vector.load %arg8[%c640, %c0_57] : memref<1280x16xbf16, #tpu.memory_space<vmem>>, vector<160x16xbf16>
    %cst_58 = arith.constant dense<0.000000e+00> : vector<2x16xf32>
    %74 = tpu.matmul %72, %73, %cst_58 {dimension_numbers = #tpu.dot_dimension_numbers<[1], [0], [0], [1], [0, 0, 1, 1], [], []>} : vector<2x160xbf16>, vector<160x16xbf16>, vector<2x16xf32> -> vector<2x16xf32>
    %75 = arith.addf %70, %74 : vector<2x16xf32>
    %c12_59 = arith.constant 12 : index
    %c0_60 = arith.constant 0 : index
    %76 = vector.load %arg12[%c12_59, %c0_60] : memref<20x160xf32, #tpu.memory_space<vmem>>, vector<2x160xf32>
    %77 = arith.truncf %76 : vector<2x160xf32> to vector<2x160xbf16>
    %c800 = arith.constant 800 : index
    %c0_61 = arith.constant 0 : index
    %78 = vector.load %arg8[%c800, %c0_61] : memref<1280x16xbf16, #tpu.memory_space<vmem>>, vector<160x16xbf16>
    %cst_62 = arith.constant dense<0.000000e+00> : vector<2x16xf32>
    %79 = tpu.matmul %77, %78, %cst_62 {dimension_numbers = #tpu.dot_dimension_numbers<[1], [0], [0], [1], [0, 0, 1, 1], [], []>} : vector<2x160xbf16>, vector<160x16xbf16>, vector<2x16xf32> -> vector<2x16xf32>
    %80 = arith.addf %75, %79 : vector<2x16xf32>
    %c14 = arith.constant 14 : index
    %c0_63 = arith.constant 0 : index
    %81 = vector.load %arg12[%c14, %c0_63] : memref<20x160xf32, #tpu.memory_space<vmem>>, vector<2x160xf32>
    %82 = arith.truncf %81 : vector<2x160xf32> to vector<2x160xbf16>
    %c960 = arith.constant 960 : index
    %c0_64 = arith.constant 0 : index
    %83 = vector.load %arg8[%c960, %c0_64] : memref<1280x16xbf16, #tpu.memory_space<vmem>>, vector<160x16xbf16>
    %cst_65 = arith.constant dense<0.000000e+00> : vector<2x16xf32>
    %84 = tpu.matmul %82, %83, %cst_65 {dimension_numbers = #tpu.dot_dimension_numbers<[1], [0], [0], [1], [0, 0, 1, 1], [], []>} : vector<2x160xbf16>, vector<160x16xbf16>, vector<2x16xf32> -> vector<2x16xf32>
    %85 = arith.addf %80, %84 : vector<2x16xf32>
    %c16 = arith.constant 16 : index
    %c0_66 = arith.constant 0 : index
    %86 = vector.load %arg12[%c16, %c0_66] : memref<20x160xf32, #tpu.memory_space<vmem>>, vector<2x160xf32>
    %87 = arith.truncf %86 : vector<2x160xf32> to vector<2x160xbf16>
    %c1120 = arith.constant 1120 : index
    %c0_67 = arith.constant 0 : index
    %88 = vector.load %arg8[%c1120, %c0_67] : memref<1280x16xbf16, #tpu.memory_space<vmem>>, vector<160x16xbf16>
    %cst_68 = arith.constant dense<0.000000e+00> : vector<2x16xf32>
    %89 = tpu.matmul %87, %88, %cst_68 {dimension_numbers = #tpu.dot_dimension_numbers<[1], [0], [0], [1], [0, 0, 1, 1], [], []>} : vector<2x160xbf16>, vector<160x16xbf16>, vector<2x16xf32> -> vector<2x16xf32>
    %90 = arith.addf %85, %89 : vector<2x16xf32>
    %c0_69 = arith.constant 0 : index
    %c0_70 = arith.constant 0 : index
    %91 = vector.load %arg2[%c0_69, %c0_70] : memref<2x1024xbf16, #tpu.memory_space<vmem>>, vector<2x1024xbf16>
    %c0_71 = arith.constant 0 : index
    %c0_72 = arith.constant 0 : index
    %92 = vector.load %arg9[%c0_71, %c0_72] : memref<1024x16xbf16, #tpu.memory_space<vmem>>, vector<1024x16xbf16>
    %cst_73 = arith.constant dense<0.000000e+00> : vector<2x16xf32>
    %93 = tpu.matmul %91, %92, %cst_73 {dimension_numbers = #tpu.dot_dimension_numbers<[1], [0], [0], [1], [0, 0, 1, 1], [], []>} : vector<2x1024xbf16>, vector<1024x16xbf16>, vector<2x16xf32> -> vector<2x16xf32>
    %c0_74 = arith.constant 0 : index
    %c0_75 = arith.constant 0 : index
    %94 = vector.load %arg10[%c0_74, %c0_75] : memref<3x16xf32, #tpu.memory_space<vmem>>, vector<1x16xf32>
    %95 = vector.broadcast %94 : vector<1x16xf32> to vector<2x16xf32>
    %96 = arith.addf %49, %95 : vector<2x16xf32>
    %c0_76 = arith.constant 0 : index
    %c0_77 = arith.constant 0 : index
    %97 = vector.load %arg11[%c0_76, %c0_77] : memref<2x48xf32, #tpu.memory_space<vmem>>, vector<2x16xf32>
    tpu.vector_store %arg11[%c0_76, %c0_77], %96 {strides = array<i32>} : memref<2x48xf32, #tpu.memory_space<vmem>>, vector<2x16xf32>,
    %c1 = arith.constant 1 : index
    %c0_78 = arith.constant 0 : index
    %98 = vector.load %arg10[%c1, %c0_78] : memref<3x16xf32, #tpu.memory_space<vmem>>, vector<1x16xf32>
    %99 = vector.broadcast %98 : vector<1x16xf32> to vector<2x16xf32>
    %100 = arith.addf %90, %99 : vector<2x16xf32>
    %c0_79 = arith.constant 0 : index
    %c16_80 = arith.constant 16 : index
    %101 = vector.load %arg11[%c0_79, %c16_80] : memref<2x48xf32, #tpu.memory_space<vmem>>, vector<2x16xf32>
    tpu.vector_store %arg11[%c0_79, %c16_80], %100 {strides = array<i32>} : memref<2x48xf32, #tpu.memory_space<vmem>>, vector<2x16xf32>,
    %c2_81 = arith.constant 2 : index
    %c0_82 = arith.constant 0 : index
    %102 = vector.load %arg10[%c2_81, %c0_82] : memref<3x16xf32, #tpu.memory_space<vmem>>, vector<1x16xf32>
    %103 = vector.broadcast %102 : vector<1x16xf32> to vector<2x16xf32>
    %104 = arith.addf %93, %103 : vector<2x16xf32>
    %c0_83 = arith.constant 0 : index
    %c32 = arith.constant 32 : index
    %105 = vector.load %arg11[%c0_83, %c32] : memref<2x48xf32, #tpu.memory_space<vmem>>, vector<2x16xf32>
    tpu.vector_store %arg11[%c0_83, %c32], %104 {strides = array<i32>} : memref<2x48xf32, #tpu.memory_space<vmem>>, vector<2x16xf32>,
    return
  }
  func.func @transform_0(%arg0: i32) -> (i32, i32) {
    %c0_i32 = arith.constant 0 : i32
    %c0_i32_0 = arith.constant 0 : i32
    %c0_i32_1 = arith.constant 0 : i32
    return %c0_i32, %c0_i32_0 : i32, i32
  }
  func.func @transform_1(%arg0: i32) -> (i32, i32) {
    %c0_i32 = arith.constant 0 : i32
    %c0_i32_0 = arith.constant 0 : i32
    %c0_i32_1 = arith.constant 0 : i32
    return %c0_i32, %c0_i32_0 : i32, i32
  }
  func.func @transform_2(%arg0: i32) -> (i32, i32) {
    %c0_i32 = arith.constant 0 : i32
    %c0_i32_0 = arith.constant 0 : i32
    %c0_i32_1 = arith.constant 0 : i32
    return %c0_i32, %c0_i32_0 : i32, i32
  }
  func.func @transform_3(%arg0: i32) -> (i32, i32) {
    %c0_i32 = arith.constant 0 : i32
    %c0_i32_0 = arith.constant 0 : i32
    %c0_i32_1 = arith.constant 0 : i32
    return %c0_i32, %c0_i32_0 : i32, i32
  }
  func.func @transform_4(%arg0: i32) -> (i32, i32) {
    %c0_i32 = arith.constant 0 : i32
    %c0_i32_0 = arith.constant 0 : i32
    %c0_i32_1 = arith.constant 0 : i32
    return %c0_i32, %c0_i32_0 : i32, i32
  }
  func.func @transform_5(%arg0: i32) -> (i32, i32) {
    %c0_i32 = arith.constant 0 : i32
    %c0_i32_0 = arith.constant 0 : i32
    %c0_i32_1 = arith.constant 0 : i32
    return %c0_i32, %c0_i32_0 : i32, i32
  }
  func.func @transform_6(%arg0: i32) -> (i32, i32) {
    %c0_i32 = arith.constant 0 : i32
    %c0_i32_0 = arith.constant 0 : i32
    %c0_i32_1 = arith.constant 0 : i32
    return %c0_i32, %c0_i32_0 : i32, i32
  }
  func.func @transform_7(%arg0: i32) -> (i32, i32) {
    %c0_i32 = arith.constant 0 : i32
    %c0_i32_0 = arith.constant 0 : i32
    %c0_i32_1 = arith.constant 0 : i32
    return %c0_i32, %c0_i32_0 : i32, i32
  }
  func.func @transform_8(%arg0: i32) -> (i32, i32) {
    %c0_i32 = arith.constant 0 : i32
    %c0_i32_0 = arith.constant 0 : i32
    %c0_i32_1 = arith.constant 0 : i32
    return %c0_i32, %c0_i32_0 : i32, i32
  }
  func.func @transform_9(%arg0: i32) -> (i32, i32) {
    %c0_i32 = arith.constant 0 : i32
    %c0_i32_0 = arith.constant 0 : i32
    %c0_i32_1 = arith.constant 0 : i32
    return %c0_i32, %c0_i32_0 : i32, i32
  }
  func.func @transform_10(%arg0: i32) -> (i32, i32) {
    %c0_i32 = arith.constant 0 : i32
    %c0_i32_0 = arith.constant 0 : i32
    %c0_i32_1 = arith.constant 0 : i32
    return %c0_i32, %c0_i32_0 : i32, i32
  }
}

</mosaic_0001>

<bundles_post_ra>
// kernel: hvae_lr_encoder_forward.1
= control target key start
LH: loop header
LB: loop body
LE: loop exit
PB: predicated region body
PF: predicated region fallthrough
CT: control target
= control target key end

     0   :  { %15 = vsyncpa [#allocation4], 0  ;;  %s5012_s0 = inlined_call_operand.vmem [shape: bf16[16,288], index: 0, kind: input, shape index: {}]   ;;  %s5013_s1 = inlined_call_operand.vmem [shape: bf16[2,1024], index: 1, kind: input, shape index: {}]   ;;  %s5014_s2 = inlined_call_operand.vmem [shape: bf16[288,160], index: 2, kind: input, shape index: {}]   ;;  %s5015_s3 = inlined_call_operand.hbm [shape: f32[16,160], index: 3, kind: input, shape index: {}]   ;;  %s5016_s4 = inlined_call_operand.vmem [shape: bf16[640,128], index: 4, kind: input, shape index: {}]   ;;  %s5017_s5 = inlined_call_operand.vmem [shape: f32[1,128], index: 5, kind: input, shape index: {}]   ;;  %s5018_s6 = inlined_call_operand.hbm [shape: bf16[512,16], index: 6, kind: input, shape index: {}]   ;;  %s5019_s7 = inlined_call_operand.vmem [shape: bf16[1280,16], index: 7, kind: input, shape index: {}]   ;;  %s5020_s8 = inlined_call_operand.vmem [shape: bf16[1024,16], index: 8, kind: input, shape index: {}]   ;;  %s5021_s9 = inlined_call_operand.vmem [shape: f32[3,16], index: 9, kind: input, shape index: {}]   ;;  %s5022_s10 = inlined_call_operand.vmem [shape: f32[2,48], index: 10, kind: output, shape index: {}]  }
   0x1   :  { %16 = vsyncpa [#allocation6], 0  ;;  %s4013_s13 = smov [#allocation3]  }
   0x2   :  { %s28_s14 = sshll.u32 %s4013_s13, 4  ;;  %s29_s14 = int_to_ptr.vmem [resolvable:$true] %s28_s14 }
   0x3   :  { %s3977_s15 = scalar_lea.vmem %s29_s14, 512  ;;  %p3982_p1 = scmp.lt.s32.totalorder %s29_s14, %s29_s14 }
   0x4   :  { %p3978_p0 = scmp.ne.s32.totalorder %s29_s14, %s3977_s15  ;;  %p3983_p2 = scmp.lt.s32.totalorder %s3977_s15, %s3977_s15 }
   0x6   :  { %p3984_p3 = por %p3983_p2, %p3982_p1 }
   0x8   :  { %p3985_p4 = pnand %p3984_p3, %p3978_p0 }
   0xa   :  { %3988 = shalt.err (!%p3985_p4)
}
   0xb   :  { %s4014_s16 = smov 256   ;;  %s4015_s17 = smov 16  }
   0xc   :  { %34 = dma.hbm_to_vmem [thread:$0]  %s5015_s3, 512, %s29_s14, [#allocation4], %s4014_s16, %s4014_s16, %s4015_s17  }
   0xd   :  { %s4016_s20 = smov [#allocation5]  }
   0xe   :  { %s44_s21 = sshll.u32 %s4016_s20, 4  ;;  %s45_s21 = int_to_ptr.vmem [resolvable:$true] %s44_s21 }
   0xf   :  { %s3997_s22 = scalar_lea.vmem %s45_s21, 4096  ;;  %p4002_p6 = scmp.lt.s32.totalorder %s45_s21, %s45_s21 }
  0x10   :  { %p3998_p5 = scmp.ne.s32.totalorder %s45_s21, %s3997_s22  ;;  %p4003_p7 = scmp.lt.s32.totalorder %s3997_s22, %s3997_s22 }
  0x12   :  { %p4004_p8 = por %p4003_p7, %p4002_p6 }
  0x14   :  { %p4005_p9 = pnand %p4004_p8, %p3998_p5 }
  0x16   :  { %4008 = shalt.err (!%p4005_p9)
}
  0x17   :  { %s4017_s23 = smov 64   ;;  %s4018_s24 = smov 4  }
  0x18   :  { %50 = dma.hbm_to_vmem [thread:$0]  %s5018_s6, 4096, %s45_s21, [#allocation6], %s4017_s23, %s4017_s23, %s4018_s24  }
  0x19   :  { %4009 = dma.done.wait [#allocation4], 512  }
  0x1a   :  { %4010 = vsyncadd [#allocation4], 4294966784 }
  0x1b   :  { %4011 = dma.done.wait [#allocation6], 4096  }
  0x1c   :  { %4012 = vsyncadd [#allocation6], 4294963200  ;;  %v4019_v0 = vmov 0   ;;  %v3693_v1 = vld [vmem:[%s5014_s2 + $0x74] ss:$8 sps:$4 sm:$0xff]   ;;  %v3751_v18 = vld [vmem:[%s5016_s4 + $0x88] sm:$0xff]  }
  0x1d   :  { %543 = vmatprep.subr.bf16.mxu1 %v4019_v0  ;;  %v3695_v2 = vld [vmem:[%s5014_s2 + $0x70] ss:$8 sps:$4 sm:$0xff]   ;;  %307 = vmatprep.subr.bf16.mxu0 %v3693_v1  ;;  %v3696_v3 = vld [vmem:[%s5014_s2 + $0x64] ss:$8 sps:$4 sm:$0xff]   ;;  %v3698_v4 = vld [vmem:[%s5014_s2 + $0x60] ss:$8 sps:$4 sm:$0xff]  }
  0x1e   :  { %308 = vmatpush1.bf16.msra.mxu0 %v3695_v2  ;;  %v3699_v5 = vld [vmem:[%s5014_s2 + $0x54] ss:$8 sps:$4 sm:$0xff]   ;;  %v3701_v6 = vld [vmem:[%s5014_s2 + $0x50] ss:$8 sps:$4 sm:$0xff]   ;;  %v3702_v7 = vld [vmem:[%s5014_s2 + $0x44] ss:$8 sps:$4 sm:$0xff]   ;;  %544 = vmatpush1.bf16.msra.mxu1 %v3751_v18 }
  0x1f   :  { %309 = vmatprep.subr.bf16.mxu0 %v3696_v3  ;;  %v3704_v8 = vld [vmem:[%s5014_s2 + $0x40] ss:$8 sps:$4 sm:$0xff]   ;;  %v3705_v9 = vld [vmem:[%s5014_s2 + $0x34] ss:$8 sps:$4 sm:$0xff]   ;;  %v3707_v10 = vld [vmem:[%s5014_s2 + $0x30] ss:$8 sps:$4 sm:$0xff]   ;;  %545 = vmatprep.subr.bf16.mxu1 %v4019_v0 }
  0x20   :  { %v3708_v11 = vld [vmem:[%s5014_s2 + $0x24] ss:$8 sps:$4 sm:$0xff]   ;;  %v3710_v12 = vld [vmem:[%s5014_s2 + $0x20] ss:$8 sps:$4 sm:$0xff]   ;;  %v3711_v13 = vld [vmem:[%s5014_s2 + $0x14] ss:$8 sps:$4 sm:$0xff]  }
  0x21   :  { %v3743_v14 = vld [vmem:[%s5012_s0 + $0x4] ss:$12 sps:$4 sm:$0xff]   ;;  %v3716_v17 = vld [vmem:[%s5014_s2] ss:$8 sps:$4 sm:$0xff]   ;;  %v3717_v19 = vld [vmem:[%s5014_s2 + $0xf4] ss:$8 sps:$4 sm:$0xff]  }
  0x22   :  { %310 = vmatpush1.bf16.msra.mxu0 %v3698_v4  ;;  %v3713_v15 = vld [vmem:[%s5014_s2 + $0x10] ss:$8 sps:$4 sm:$0xff]   ;;  %v3714_v16 = vld [vmem:[%s5014_s2 + $0x4] ss:$8 sps:$4 sm:$0xff]   ;;  %339 = vmatprep.mubr.bf16.mxu0 %v3743_v14  ;;  %v3722_v23 = vld [vmem:[%s5014_s2 + $0xe0] ss:$8 sps:$4 sm:$0xff]  }
  0x23   :  { %311 = vmatprep.subr.bf16.mxu0 %v3699_v5  ;;  %v3753_v20 = vld [vmem:[%s5016_s4 + $0x80] sm:$0xff]   ;;  %v3719_v21 = vld [vmem:[%s5014_s2 + $0xf0] ss:$8 sps:$4 sm:$0xff]   ;;  %v3723_v24 = vld [vmem:[%s5014_s2 + $0xd4] ss:$8 sps:$4 sm:$0xff]   ;;  %vm303_vm0 = vcmask 261120  }
  0x24   :  { %v3720_v22 = vld [vmem:[%s5014_s2 + $0xe4] ss:$8 sps:$4 sm:$0xff]   ;;  %546 = vmatpush1.bf16.msra.mxu1 %v3753_v20  ;;  %v3725_v25 = vld [vmem:[%s5014_s2 + $0xd0] ss:$8 sps:$4 sm:$0xff]   ;;  %v3728_v27 = vld [vmem:[%s5014_s2 + $0xc0] ss:$8 sps:$4 sm:$0xff]  }
  0x25   :  { %547 = vmatprep.subr.bf16.mxu1 %v4019_v0  ;;  %v3726_v26 = vld [vmem:[%s5014_s2 + $0xc4] ss:$8 sps:$4 sm:$0xff]   ;;  %v3729_v28 = vld [vmem:[%s5014_s2 + $0xb4] ss:$8 sps:$4 sm:$0xff]   ;;  %v3731_v29 = vld [vmem:[%s5014_s2 + $0xb0] ss:$8 sps:$4 sm:$0xff]  }
  0x26   :  { %312 = vmatpush1.bf16.msra.mxu0 %v3701_v6  ;;  %v3732_v30 = vld [vmem:[%s5014_s2 + $0xa4] ss:$8 sps:$4 sm:$0xff]   ;;  %v3734_v31 = vld [vmem:[%s5014_s2 + $0xa0] ss:$8 sps:$4 sm:$0xff]   ;;  %v3735_v32 = vld [vmem:[%s5014_s2 + $0x94] ss:$8 sps:$4 sm:$0xff]  }
  0x27   :  { %313 = vmatprep.subr.bf16.mxu0 %v3702_v7  ;;  %v3737_v33 = vld [vmem:[%s5014_s2 + $0x90] ss:$8 sps:$4 sm:$0xff]   ;;  %v3738_v34 = vld [vmem:[%s5014_s2 + $0x84] ss:$8 sps:$4 sm:$0xff]   ;;  %v3740_v35 = vld [vmem:[%s5014_s2 + $0x80] ss:$8 sps:$4 sm:$0xff]  }
  0x28   :  { %v3746_v36 = vld [vmem:[%s5014_s2 + $0x114] ss:$8 sps:$4 sm:$0xff]   ;;  %v3741_v37 = vld [vmem:[%s5012_s0] ss:$12 sps:$4 sm:$0xff]   ;;  %v3744_v38 = vld [vmem:[%s5014_s2 + $0x110] ss:$8 sps:$4 sm:$0xff]  }
  0x29   :  { %v3749_v39 = vld [vmem:[%s5014_s2 + $0x104] ss:$8 sps:$4 sm:$0xff]   ;;  %v3747_v40 = vld [vmem:[%s5014_s2 + $0x100] ss:$8 sps:$4 sm:$0xff]   ;;  %v3752_v42 = vld [vmem:[%s5016_s4 + $0xd8] sm:$0xff]   ;;  %v4020_v50 = vmov 0.0  }
  0x2a   :  { %314 = vmatpush1.bf16.msra.mxu0 %v3704_v8  ;;  %v3750_v41 = vld [vmem:[%s5012_s0 + $0x8] ss:$12 sps:$4 sm:$0xff]   ;;  %v3755_v44 = vld [vmem:[%s5016_s4 + $0x78] sm:$0xff]   ;;  %v3758_v47 = vld [vmem:[%s5016_s4 + $0xc0] sm:$0xff]   ;;  %393 = vst [vmem:[#allocation2] sm:$0xff] %v4020_v50  ;;  %vm398_vm1 = vcmask 257024  }
  0x2b   :  { %315 = vmatprep.subr.bf16.mxu0 %v3705_v9  ;;  %v3754_v43 = vld [vmem:[%s5016_s4 + $0xd0] sm:$0xff]   ;;  %v3756_v45 = vld [vmem:[%s5016_s4 + $0xc8] sm:$0xff]   ;;  %548 = vmatpush1.bf16.msra.mxu1 %v3755_v44  ;;  %v3760_v49 = vld [vmem:[%s5016_s4 + $0xb8] sm:$0xff]   ;;  %394 = vst.msk [vmem:[#allocation2 + $0x8] sm:$0xff] %vm303_vm0, %v4020_v50  ;;  %vm418_vm2 = vcmask 261122   ;;  %vm404_vm3 = vcmask 1041408  }
  0x2c   :  { %549 = vmatprep.subr.bf16.mxu1 %v4019_v0  ;;  %v3757_v46 = vld [vmem:[%s5016_s4 + $0x70] sm:$0xff]   ;;  %v3759_v48 = vld [vmem:[%s5016_s4 + $0x68] sm:$0xff]   ;;  %396 = vst.msk [vmem:[#allocation2 + $0x18] sm:$0xff] %vm303_vm0, %v4020_v50  ;;  %397 = vst [vmem:[#allocation2 + $0x20] sm:$0xf] %v4020_v50  ;;  %vm423_vm4 = vcmask 254976  }
  0x2d   :  { %v3761_v51 = vld [vmem:[%s5016_s4 + $0x60] sm:$0xff]   ;;  %v3762_v52 = vld [vmem:[%s5016_s4 + $0xb0] sm:$0xff]   ;;  %v3763_v53 = vld [vmem:[%s5016_s4 + $0x58] sm:$0xff]   ;;  %399 = vst.msk [vmem:[#allocation2 + $0x28] sm:$0xf] %vm398_vm1, %v4020_v50  ;;  %vm4021_vm5 = vmmov 0  }
  0x2e   :  { %316 = vmatpush1.bf16.msra.mxu0 %v3707_v10  ;;  %v3764_v54 = vld [vmem:[%s5016_s4 + $0xa8] sm:$0xff]   ;;  %v3765_v55 = vld [vmem:[%s5016_s4 + $0x50] sm:$0xff]   ;;  %v3766_v56 = vld [vmem:[%s5016_s4 + $0xa0] sm:$0xff]   ;;  %vm2573_vm6 = vcmask 123904   ;;  %vm2585_vm7 = vcmask 255104   ;;  %vm3198_vm8 = vcmask 386304  }
  0x2f   :  { %317 = vmatprep.subr.bf16.mxu0 %v3708_v11  ;;  %550 = vmatpush1.bf16.msra.mxu1 %v3757_v46  ;;  %v3767_v57 = vld [vmem:[%s5016_s4 + $0x98] sm:$0xff]   ;;  %v3768_v58 = vld [vmem:[%s5016_s4 + $0xe8] sm:$0xff]   ;;  %v3769_v59 = vld [vmem:[%s5016_s4 + $0x90] sm:$0xff]  }
  0x30   :  { %551 = vmatprep.subr.bf16.mxu1 %v4019_v0  ;;  %v3770_v60 = vld [vmem:[%s5016_s4 + $0xe0] sm:$0xff]   ;;  %v104_v63 = vld [vmem:[#allocation3] sm:$0xff]  ;;  %v105_v2 = vld [vmem:[#allocation3 + $0x8] sm:$0xff] }
  0x31   :  { %v106_v5 = vld [vmem:[#allocation3 + $0x10] sm:$0xff]  ;;  %v107_v9 = vld [vmem:[#allocation3 + $0x18] sm:$0xff]  ;;  %v3775_v46 = vld [vmem:[%s5016_s4 + $0x18] sm:$0xff]  }
  0x32   :  { %318 = vmatpush1.bf16.msra.mxu0 %v3710_v12  ;;  %v3773_v44 = vld [vmem:[%s5016_s4 + $0x28] sm:$0xff]  }
  0x33   :  { %319 = vmatprep.subr.bf16.mxu0 %v3711_v13  ;;  %552 = vmatpush1.bf16.msra.mxu1 %v3759_v48  ;;  %v3777_v48 = vld [vmem:[%s5016_s4 + $0x8] sm:$0xff]  }
  0x34   :  { %553 = vmatprep.subr.bf16.mxu1 %v4019_v0 }
  0x36   :  { %320 = vmatpush1.bf16.msra.mxu0 %v3713_v15 }
  0x37   :  { %321 = vmatprep.subr.bf16.mxu0 %v3714_v16  ;;  %554 = vmatpush1.bf16.msra.mxu1 %v3761_v51  ;;  %v3779_v51 = vld [vmem:[%s5016_s4 + $0x48] sm:$0xff]  }
  0x38   :  { %555 = vmatprep.subr.bf16.mxu1 %v4019_v0 }
  0x3a   :  { %322 = vmatpush1.bf16.msra.mxu0 %v3716_v17 }
  0x3b   :  { %323 = vmatprep.subr.bf16.mxu0 %v3717_v19  ;;  %556 = vmatpush1.bf16.msra.mxu1 %v3763_v53 }
  0x3c   :  { %557 = vmatprep.subr.bf16.mxu1 %v4019_v0 }
  0x3e   :  { %324 = vmatpush2.bf16.msra.mxu0 %v3719_v21 }
  0x3f   :  { %325 = vmatprep.subr.bf16.mxu0 %v3720_v22  ;;  %558 = vmatpush1.bf16.msra.mxu1 %v3765_v55 }
  0x40   :  { %571 = vmatprep.subr.bf16.mxu1 %v4019_v0 }
  0x42   :  { %326 = vmatpush2.bf16.msra.mxu0 %v3722_v23 }
  0x43   :  { %327 = vmatprep.subr.bf16.mxu0 %v3723_v24  ;;  %572 = vmatpush2.bf16.msra.mxu1 %v3767_v57  ;;  %v3781_v57 = vld [vmem:[%s5016_s4 + $0x128] sm:$0xff]  }
  0x44   :  { %573 = vmatprep.subr.bf16.mxu1 %v4019_v0 }
  0x46   :  { %328 = vmatpush2.bf16.msra.mxu0 %v3725_v25 }
  0x47   :  { %329 = vmatprep.subr.bf16.mxu0 %v3726_v26  ;;  %574 = vmatpush2.bf16.msra.mxu1 %v3769_v59 }
  0x48   :  { %646 = vmatprep.subr.bf16.mxu1 %v4019_v0 }
  0x4a   :  { %330 = vmatpush2.bf16.msra.mxu0 %v3728_v27 }
  0x4b   :  { %331 = vmatprep.subr.bf16.mxu0 %v3729_v28 }
  0x4e   :  { %332 = vmatpush2.bf16.msra.mxu0 %v3731_v29 }
  0x4f   :  { %333 = vmatprep.subr.bf16.mxu0 %v3732_v30 }
  0x52   :  { %334 = vmatpush2.bf16.msra.mxu0 %v3734_v31 }
  0x53   :  { %335 = vmatprep.subr.bf16.mxu0 %v3735_v32 }
  0x56   :  { %336 = vmatpush2.bf16.msra.mxu0 %v3737_v33 }
  0x57   :  { %337 = vmatprep.subr.bf16.mxu0 %v3738_v34 }
  0x5a   :  { %338 = vmatpush2.bf16.msra.mxu0 %v3740_v35 }
  0x5b   :  { %362 = vmatprep.subr.bf16.mxu0 %v3746_v36 }
  0x5d   :  { %340 = vmatmul.mubr.bf16.vlgmr.msra.gmra.mxu0 %v3741_v37 }
  0x5e   :  { %363 = vmatpush1.bf16.msra.mxu0 %v3744_v38  ;;  %382 = vmatprep.mubr.bf16.mxu0 %v4019_v0 }
  0x5f   :  { %364 = vmatprep.subr.bf16.mxu0 %v3749_v39  ;;  %v3771_v39 = vld [vmem:[%s5016_s4 + $0x38] sm:$0xff]  }
  0x62   :  { %365 = vmatpush1.bf16.msra.mxu0 %v3747_v40 }
  0x63   :  { %780 = vmatprep.subr.bf16.mxu0 %v4019_v0 }
  0x65   :  { %3245 = vmatmul.mubr.msk.bf16.vlgmr.msra.gmra.mxu0 %vm303_vm0, %v3750_v41 }
  0x66   :  { %781 = vmatpush1.bf16.msra.mxu0 %v3752_v42 }
  0x67   :  { %782 = vmatprep.subr.bf16.mxu0 %v4019_v0 }
  0x6a   :  { %783 = vmatpush1.bf16.msra.mxu0 %v3754_v43  ;;  %v3772_v43 = vld [vmem:[%s5016_s4 + $0x30] sm:$0xff]  }
  0x6b   :  { %784 = vmatprep.subr.bf16.mxu0 %v4019_v0 }
  0x6e   :  { %785 = vmatpush1.bf16.msra.mxu0 %v3756_v45  ;;  %v3774_v45 = vld [vmem:[%s5016_s4 + $0x20] sm:$0xff]  }
  0x6f   :  { %786 = vmatprep.subr.bf16.mxu0 %v4019_v0 }
  0x72   :  { %787 = vmatpush1.bf16.msra.mxu0 %v3758_v47  ;;  %v3776_v47 = vld [vmem:[%s5016_s4 + $0x10] sm:$0xff]  }
  0x73   :  { %788 = vmatprep.subr.bf16.mxu0 %v4019_v0 }
  0x76   :  { %789 = vmatpush1.bf16.msra.mxu0 %v3760_v49  ;;  %v3778_v49 = vld [vmem:[%s5016_s4] sm:$0xff]  }
  0x77   :  { %790 = vmatprep.subr.bf16.mxu0 %v4019_v0 }
  0x7a   :  { %791 = vmatpush1.bf16.msra.mxu0 %v3762_v52 }
  0x7b   :  { %792 = vmatprep.subr.bf16.mxu0 %v4019_v0 }
  0x7e   :  { %793 = vmatpush1.bf16.msra.mxu0 %v3764_v54  ;;  %v3780_v54 = vld [vmem:[%s5016_s4 + $0x40] sm:$0xff]  }
  0x7f   :  { %794 = vmatprep.subr.bf16.mxu0 %v4019_v0 }
  0x82   :  { %795 = vmatpush1.bf16.msra.mxu0 %v3766_v56 }
  0x83   :  { %808 = vmatprep.subr.bf16.mxu0 %v4019_v0 }
  0x86   :  { %809 = vmatpush2.bf16.msra.mxu0 %v3768_v58 }
  0x87   :  { %810 = vmatprep.subr.bf16.mxu0 %v4019_v0 }
  0x8a   :  { %811 = vmatpush2.bf16.msra.mxu0 %v3770_v60  ;;  %v3782_v60 = vld [vmem:[%s5016_s4 + $0x120] sm:$0xff]  }
  0x8b   :  { %3602 = vmatprep.subr.bf16.mxu0 %v4020_v50 }
 0x11d   :  { %v341_v61 = vpop.f32.mrf.mxu0 }
 0x11e   :  { %v342_v4 = vadd.f32 %v341_v61, %v104_v63  ;;  %v3783_v61 = vld [vmem:[%s5016_s4 + $0x118] sm:$0xff]   ;;  %v3785_v63 = vld [vmem:[%s5016_s4 + $0x108] sm:$0xff]  }
 0x11f   :  { %v343_v62 = vpop.f32.mrf.mxu0 }
 0x120   :  { %v344_v7 = vadd.f32 %v343_v62, %v105_v2  ;;  %v3784_v62 = vld [vmem:[%s5016_s4 + $0x110] sm:$0xff]   ;;  %v3787_v2 = vld [vmem:[%s5016_s4 + $0xf8] sm:$0xff]  }
 0x121   :  { %v345_v1 = vpop.f32.mrf.mxu0 }
 0x122   :  { %v346_v11 = vadd.f32 %v345_v1, %v106_v5  ;;  %v3786_v1 = vld [vmem:[%s5016_s4 + $0x100] sm:$0xff]  }
 0x123   :  { %v347_v3 = vpop.f32.mrf.mxu0 }
 0x124   :  { %v348_v15 = vadd.f32 %v347_v3, %v107_v9  ;;  %v3788_v3 = vld [vmem:[%s5016_s4 + $0xf0] sm:$0xff]  }
 0x125   :  { %v384_v6 = vpop.f32.mrf.mxu0 }
 0x126   :  { %v385_v8 = vadd.f32 %v384_v6, %v342_v4  ;;  %v3789_v4 = vld [vmem:[%s5016_s4 + $0x138] sm:$0xff]  }
 0x127   :  { %v386_v10 = vpop.f32.mrf.mxu0 }
 0x128   :  { %v405_v12 = vrot.slane %v385_v8, 6  ;;  %v387_v13 = vadd.f32 %v386_v10, %v344_v7  ;;  %v3790_v7 = vld [vmem:[%s5016_s4 + $0x130] sm:$0xff]   ;;  %v3791_v10 = vld [vmem:[#allocation5 + $0x38] sm:$0xff]  }
 0x129   :  { %v388_v14 = vpop.f32.mrf.mxu0 }
 0x12a   :  { %417 = vst [vmem:[#allocation2] sm:$0xfc] %v405_v12  ;;  %v406_v16 = vrot.slane %v387_v13, 6  ;;  %v389_v17 = vadd.f32 %v388_v14, %v346_v11  ;;  %v3792_v11 = vld [vmem:[#allocation5 + $0x78] sm:$0xff]   ;;  %v3794_v13 = vld [vmem:[#allocation5 + $0x70] sm:$0xff]   ;;  %v3795_v14 = vld [vmem:[#allocation5 + $0x28] sm:$0xff]  }
 0x12b   :  { %v390_v18 = vpop.f32.mrf.mxu0 }
 0x12c   :  { %419 = vst.msk [vmem:[#allocation2 + $0x8] sm:$0xfc] %vm418_vm2, %v406_v16  ;;  %v407_v19 = vrot.slane %v389_v17, 6  ;;  %v391_v20 = vadd.f32 %v390_v18, %v348_v15  ;;  %v3796_v15 = vld [vmem:[#allocation5 + $0x68] sm:$0xff]   ;;  %v3798_v17 = vld [vmem:[#allocation5 + $0x60] sm:$0xff]   ;;  %v3799_v18 = vld [vmem:[#allocation5 + $0x18] sm:$0xff]  }
 0x12e   :  { %v408_v21 = vsel %vm404_vm3, %v405_v12, %v407_v19  ;;  %422 = vst [vmem:[#allocation2 + $0x20] sm:$0x3] %v407_v19  ;;  %v409_v22 = vrot.slane %v391_v20, 6  ;;  %v3793_v12 = vld [vmem:[#allocation5 + $0x30] sm:$0xff]   ;;  %v3800_v19 = vld [vmem:[#allocation5 + $0x58] sm:$0xff]  }
 0x12f   :  { %420 = vst [vmem:[#allocation2 + $0x10] sm:$0xff] %v408_v21  ;;  %v3801_v20 = vld [vmem:[#allocation5 + $0x10] sm:$0xff]  }
 0x130   :  { %v410_v23 = vsel %vm404_vm3, %v406_v16, %v409_v22  ;;  %424 = vst.msk [vmem:[#allocation2 + $0x28] sm:$0x3] %vm423_vm4, %v409_v22  ;;  %v3797_v16 = vld [vmem:[#allocation5 + $0x20] sm:$0xff]   ;;  %v3802_v21 = vld [vmem:[#allocation5 + $0x50] sm:$0xff]   ;;  %v3803_v22 = vld [vmem:[#allocation5 + $0x8] sm:$0xff]  }
 0x131   :  { %421 = vst.msk [vmem:[#allocation2 + $0x18] sm:$0xff] %vm303_vm0, %v410_v23  ;;  %v686_v28 = vld [vmem:[#allocation2] sm:$0xfc]  ;;  %v3804_v23 = vld [vmem:[#allocation5 + $0x48] sm:$0xff]  }
 0x132   :  { %v425_v55 = vld [vmem:[#allocation2] sm:$0xff] }
 0x133   :  { %v687_v30 = vld [vmem:[#allocation2 + $0x8] sm:$0xfc]  ;;  %v427_v58 = vpack.c.bf16 %v425_v55, %v425_v55  ;;  %v3809_v55 = vld [vmem:[#allocation5 + $0xf0] sm:$0xff]  }
 0x134   :  { %v426_v36 = vld [vmem:[#allocation2 + $0x8] sm:$0xff] }
 0x135   :  { %v451_v24 = vld [vmem:[#allocation2 + $0x20] sm:$0x3]  ;;  %v428_v42 = vpack.c.bf16 %v426_v36, %v426_v36 }
 0x136   :  { %v449_v25 = vld [vmem:[#allocation2 + $0x10] sm:$0xfc]  ;;  %v4295_v26 = vld [vmem:[#allocation2 + $0x10] sm:$0x3]  ;;  %v823_v6 = vld [vmem:[#allocation2 + $0x20] sm:$0xf] }
 0x137   :  { %v4297_v27 = vld [vmem:[#allocation2 + $0x28] sm:$0x3]  ;;  %v453_v32 = vpack.c.bf16 %v451_v24, %v449_v25  ;;  %v690_v33 = vpack.c.bf16 %v4295_v26, %v686_v28  ;;  %v821_v5 = vld [vmem:[#allocation2 + $0x10] sm:$0xf0] }
 0x138   :  { %v450_v29 = vld [vmem:[#allocation2 + $0x18] sm:$0xfc]  ;;  %v4299_v31 = vld [vmem:[#allocation2 + $0x18] sm:$0x3]  ;;  %v824_v53 = vld [vmem:[#allocation2 + $0x28] sm:$0xf]  ;;  %v825_v8 = vpack.c.bf16 %v823_v6, %v821_v5 }
 0x139   :  { %v454_v34 = vpack.c.bf16 %v4297_v27, %v450_v29  ;;  %v691_v35 = vpack.c.bf16 %v4299_v31, %v687_v30  ;;  %v477_v40 = vrot.slane %v453_v32, 1  ;;  %v714_v41 = vrot.slane %v690_v33, 1  ;;  %v822_v52 = vld [vmem:[#allocation2 + $0x18] sm:$0xf0]  ;;  %v3805_v24 = vld [vmem:[#allocation5] sm:$0xff]  }
 0x13a   :  { %v826_v56 = vpack.c.bf16 %v824_v53, %v822_v52  ;;  %v849_v9 = vrot.slane %v825_v8, 2  ;;  %v3806_v25 = vld [vmem:[#allocation5 + $0x40] sm:$0xff]   ;;  %v3808_v53 = vld [vmem:[#allocation5 + $0xb8] sm:$0xff]  }
 0x13b   :  { %v478_v37 = vrot.slane %v454_v34, 1  ;;  %v715_v38 = vrot.slane %v691_v35, 1  ;;  %v3821_v5 = vld [vmem:[#allocation5 + $0xc0] sm:$0xff]   ;;  %v1415_v6 = vld [vmem:[#allocation2 + $0x8] sm:$0x30] }
 0x13c   :  { %v850_v59 = vrot.slane %v826_v56, 2  ;;  %v3810_v56 = vld [vmem:[#allocation5 + $0xb0] sm:$0xff]  }
 0x13d   :  { %3256 = vmatprep.mubr.msk.bf16.mxu1 %vm303_vm0, %v478_v37  ;;  %3278 = vmatprep.mubr.msk.bf16.mxu0 %vm303_vm0, %v715_v38 }
 0x13e   :  { %576 = vmatmul.mubr.bf16.vlgmr.msra.gmra.mxu1 %v477_v40  ;;  %813 = vmatmul.mubr.bf16.vlgmr.msra.gmra.mxu0 %v714_v41 }
 0x13f   :  { %647 = vmatpush1.bf16.msra.mxu1 %v3771_v39  ;;  %3267 = vmatprep.mubr.msk.bf16.mxu1 %vm303_vm0, %v428_v42 }
 0x140   :  { %648 = vmatprep.subr.bf16.mxu1 %v4019_v0  ;;  %3603 = vmatpush3.bf16.msra.mxu0 %v3792_v11 }
 0x141   :  { %3604 = vmatprep.subr.bf16.mxu0 %v4020_v50  ;;  %3618 = vmatprep.mubr.msk.bf16.mxu0 %vm4021_vm5, %v4020_v50 }
 0x143   :  { %649 = vmatpush1.bf16.msra.mxu1 %v3772_v43 }
 0x144   :  { %650 = vmatprep.subr.bf16.mxu1 %v4019_v0  ;;  %3605 = vmatpush3.bf16.msra.mxu0 %v3794_v13  ;;  %v3824_v13 = vld [vmem:[%s5019_s7 + $0x88] sm:$0xff]  }
 0x145   :  { %3606 = vmatprep.subr.bf16.mxu0 %v4020_v50 }
 0x147   :  { %651 = vmatpush1.bf16.msra.mxu1 %v3773_v44  ;;  %v3290_v44 = vld [vmem:[%s5017_s5] ss:$0 sm:$0xff] }
 0x148   :  { %652 = vmatprep.subr.bf16.mxu1 %v4019_v0  ;;  %3607 = vmatpush3.bf16.msra.mxu0 %v3796_v15  ;;  %v3825_v15 = vld [vmem:[%s5019_s7 + $0x30] sm:$0xff]  }
 0x149   :  { %3608 = vmatprep.subr.bf16.mxu0 %v4020_v50 }
 0x14b   :  { %653 = vmatpush1.bf16.msra.mxu1 %v3774_v45 }
 0x14c   :  { %654 = vmatprep.subr.bf16.mxu1 %v4019_v0  ;;  %3609 = vmatpush3.bf16.msra.mxu0 %v3798_v17  ;;  %v3827_v17 = vld [vmem:[%s5019_s7 + $0x28] sm:$0xff]  }
 0x14d   :  { %3610 = vmatprep.subr.bf16.mxu0 %v4020_v50 }
 0x14f   :  { %655 = vmatpush1.bf16.msra.mxu1 %v3775_v46 }
 0x150   :  { %656 = vmatprep.subr.bf16.mxu1 %v4019_v0  ;;  %3611 = vmatpush3.bf16.msra.mxu0 %v3800_v19  ;;  %v3829_v19 = vld [vmem:[%s5019_s7 + $0x20] sm:$0xff]  }
 0x151   :  { %3612 = vmatprep.subr.bf16.mxu0 %v4020_v50 }
 0x153   :  { %657 = vmatpush1.bf16.msra.mxu1 %v3776_v47 }
 0x154   :  { %658 = vmatprep.subr.bf16.mxu1 %v4019_v0  ;;  %3613 = vmatpush3.bf16.msra.mxu0 %v3802_v21  ;;  %v3831_v21 = vld [vmem:[%s5019_s7 + $0x18] sm:$0xff]  }
 0x155   :  { %3614 = vmatprep.subr.bf16.mxu0 %v4020_v50 }
 0x157   :  { %659 = vmatpush1.bf16.msra.mxu1 %v3777_v48 }
 0x158   :  { %660 = vmatprep.subr.bf16.mxu1 %v4019_v0  ;;  %3615 = vmatpush3.bf16.msra.mxu0 %v3804_v23  ;;  %v3833_v23 = vld [vmem:[%s5019_s7 + $0x10] sm:$0xff]  }
 0x159   :  { %3616 = vmatprep.subr.bf16.mxu0 %v4020_v50 }
 0x15b   :  { %661 = vmatpush1.bf16.msra.mxu1 %v3778_v49  ;;  %v3807_v49 = vld [vmem:[#allocation5 + $0xf8] sm:$0xff]  }
 0x15c   :  { %674 = vmatprep.subr.bf16.mxu1 %v4019_v0  ;;  %3617 = vmatpush3.bf16.msra.mxu0 %v3806_v25  ;;  %v3835_v25 = vld [vmem:[%s5019_s7 + $0x8] sm:$0xff]  }
 0x15d   :  { %3642 = vmatprep.subr.bf16.mxu0 %v4020_v50 }
 0x15f   :  { %675 = vmatpush2.bf16.msra.mxu1 %v3779_v51 }
 0x160   :  { %676 = vmatprep.subr.bf16.mxu1 %v4019_v0 }
 0x163   :  { %677 = vmatpush2.bf16.msra.mxu1 %v3780_v54 }
 0x164   :  { %915 = vmatprep.subr.bf16.mxu1 %v4019_v0 }
 0x166   :  { %679 = vmatmul.mubr.bf16.vlgmr.msra.gmra.mxu1 %v427_v58  ;;  %v3812_v58 = vld [vmem:[#allocation5 + $0xa8] sm:$0xff]  }
 0x167   :  { %916 = vmatpush1.bf16.msra.mxu1 %v3781_v57  ;;  %3289 = vmatprep.mubr.msk.bf16.mxu1 %vm303_vm0, %v850_v59  ;;  %v3811_v57 = vld [vmem:[#allocation5 + $0xe8] sm:$0xff]   ;;  %v3813_v59 = vld [vmem:[#allocation5 + $0xe0] sm:$0xff]  }
 0x168   :  { %917 = vmatprep.subr.bf16.mxu1 %v4019_v0 }
 0x16b   :  { %918 = vmatpush1.bf16.msra.mxu1 %v3782_v60  ;;  %v3814_v60 = vld [vmem:[#allocation5 + $0xa0] sm:$0xff]  }
 0x16c   :  { %919 = vmatprep.subr.bf16.mxu1 %v4019_v0 }
 0x16f   :  { %920 = vmatpush1.bf16.msra.mxu1 %v3783_v61  ;;  %v3815_v61 = vld [vmem:[#allocation5 + $0xd8] sm:$0xff]  }
 0x170   :  { %921 = vmatprep.subr.bf16.mxu1 %v4019_v0 }
 0x173   :  { %922 = vmatpush1.bf16.msra.mxu1 %v3784_v62  ;;  %v3816_v62 = vld [vmem:[#allocation5 + $0x98] sm:$0xff]  }
 0x174   :  { %923 = vmatprep.subr.bf16.mxu1 %v4019_v0 }
 0x177   :  { %924 = vmatpush1.bf16.msra.mxu1 %v3785_v63  ;;  %v3817_v63 = vld [vmem:[#allocation5 + $0xd0] sm:$0xff]  }
 0x178   :  { %925 = vmatprep.subr.bf16.mxu1 %v4019_v0 }
 0x17b   :  { %926 = vmatpush1.bf16.msra.mxu1 %v3786_v1  ;;  %v3818_v1 = vld [vmem:[#allocation5 + $0x90] sm:$0xff]  }
 0x17c   :  { %927 = vmatprep.subr.bf16.mxu1 %v4019_v0 }
 0x17f   :  { %928 = vmatpush1.bf16.msra.mxu1 %v3787_v2  ;;  %v3819_v2 = vld [vmem:[#allocation5 + $0xc8] sm:$0xff]  }
 0x180   :  { %929 = vmatprep.subr.bf16.mxu1 %v4019_v0 }
 0x183   :  { %930 = vmatpush1.bf16.msra.mxu1 %v3788_v3  ;;  %v3820_v3 = vld [vmem:[#allocation5 + $0x88] sm:$0xff]  }
 0x184   :  { %943 = vmatprep.subr.bf16.mxu1 %v4019_v0 }
 0x187   :  { %944 = vmatpush2.bf16.msra.mxu1 %v3789_v4  ;;  %v1391_v4 = vld [vmem:[#allocation2 + $0x8] sm:$0xc] }
 0x188   :  { %945 = vmatprep.subr.bf16.mxu1 %v4019_v0  ;;  %v1393_v8 = vpack.c.bf16 %v1391_v4, %v1391_v4  ;;  %v1914_v4 = vld [vmem:[#allocation2 + $0x18] sm:$0xc] }
 0x18b   :  { %946 = vmatpush2.bf16.msra.mxu1 %v3790_v7  ;;  %v3822_v7 = vld [vmem:[#allocation5 + $0x80] sm:$0xff]  }
 0x18c   :  { %3622 = vmatprep.subr.bf16.mxu1 %v4020_v50 }
 0x18e   :  { %948 = vmatmul.mubr.bf16.vlgmr.msra.gmra.mxu1 %v849_v9  ;;  %v3823_v9 = vld [vmem:[%s5019_s7 + $0x38] sm:$0xff]  }
 0x18f   :  { %3623 = vmatpush3.bf16.msra.mxu1 %v3791_v10  ;;  %3638 = vmatprep.mubr.msk.bf16.mxu1 %vm4021_vm5, %v4020_v50  ;;  %v1417_v10 = vpack.c.bf16 %v1415_v6, %v1415_v6 }
 0x190   :  { %3624 = vmatprep.subr.bf16.mxu1 %v4020_v50 }
 0x193   :  { %3625 = vmatpush3.bf16.msra.mxu1 %v3793_v12  ;;  %v1549_v12 = vrot.slane %v1393_v8, 1  ;;  %v3863_v8 = vld [vmem:[%s5019_s7 + $0x1c8] sm:$0xff]  }
 0x194   :  { %3626 = vmatprep.subr.bf16.mxu1 %v4020_v50 }
 0x197   :  { %3627 = vmatpush3.bf16.msra.mxu1 %v3795_v14 }
 0x198   :  { %3628 = vmatprep.subr.bf16.mxu1 %v4020_v50 }
 0x19b   :  { %3629 = vmatpush3.bf16.msra.mxu1 %v3797_v16  ;;  %v3826_v16 = vld [vmem:[%s5019_s7 + $0x80] sm:$0xff]  }
 0x19c   :  { %3630 = vmatprep.subr.bf16.mxu1 %v4020_v50 }
 0x19f   :  { %3631 = vmatpush3.bf16.msra.mxu1 %v3799_v18  ;;  %v3828_v18 = vld [vmem:[%s5019_s7 + $0x78] sm:$0xff]  }
 0x1a0   :  { %3632 = vmatprep.subr.bf16.mxu1 %v4020_v50 }
 0x1a3   :  { %3633 = vmatpush3.bf16.msra.mxu1 %v3801_v20  ;;  %v3830_v20 = vld [vmem:[%s5019_s7 + $0x70] sm:$0xff]  }
 0x1a4   :  { %3634 = vmatprep.subr.bf16.mxu1 %v4020_v50 }
 0x1a7   :  { %3635 = vmatpush3.bf16.msra.mxu1 %v3803_v22  ;;  %v3832_v22 = vld [vmem:[%s5019_s7 + $0x68] sm:$0xff]  }
 0x1a8   :  { %3636 = vmatprep.subr.bf16.mxu1 %v4020_v50 }
 0x1ab   :  { %3637 = vmatpush3.bf16.msra.mxu1 %v3805_v24  ;;  %v3834_v24 = vld [vmem:[%s5019_s7 + $0x60] sm:$0xff]  }
 0x1ac   :  { %3662 = vmatprep.subr.bf16.mxu1 %v4020_v50 }
 0x1fe   :  { %v577_v28 = vpop.f32.mrf.mxu1  ;;  %v814_v29 = vpop.f32.mrf.mxu0 }
 0x200   :  { %v579_v30 = vpop.f32.mrf.mxu1  ;;  %v816_v32 = vpop.f32.mrf.mxu0 }
 0x201   :  { %v3838_v30 = vld [vmem:[%s5019_s7 + $0x50] sm:$0xff]   ;;  %v3839_v32 = vld [vmem:[%s5019_s7 + $0x48] sm:$0xff]  }
 0x202   :  { %v580_v33 = vpop.f32.mrf.mxu1  ;;  %v817_v34 = vpop.f32.mrf.mxu0 }
 0x203   :  { %v3840_v33 = vld [vmem:[%s5019_s7 + $0x98] sm:$0xff]   ;;  %v1390_v34 = vld [vmem:[#allocation2] sm:$0xc] }
 0x204   :  { %v581_v35 = vpop.f32.mrf.mxu1  ;;  %v818_v36 = vpop.f32.mrf.mxu0 }
 0x205   :  { %v3841_v35 = vld [vmem:[%s5019_s7 + $0x40] sm:$0xff]  }
 0x206   :  { %v1414_v36 = vld [vmem:[#allocation2] sm:$0x30] }
 0x226   :  { %v680_v37 = vpop.f32.mrf.mxu1 }
 0x227   :  { %v681_v38 = vadd.f32 %v680_v37, %v577_v28  ;;  %v3836_v28 = vld [vmem:[%s5019_s7 + $0x58] sm:$0xff]   ;;  %v1392_v37 = vpack.c.bf16 %v1390_v34, %v1390_v34  ;;  %v1913_v34 = vld [vmem:[#allocation2 + $0x10] sm:$0xc] }
 0x228   :  { %v682_v39 = vpop.f32.mrf.mxu1 }
 0x229   :  { %v820_v40 = vadd.f32 %v814_v29, %v681_v38  ;;  %v3837_v29 = vld [vmem:[%s5019_s7] sm:$0xff]   ;;  %v1655_v38 = vld [vmem:[#allocation2 + $0x8] sm:$0xc0]  ;;  %v3842_v39 = vld [vmem:[%s5019_s7 + $0x90] sm:$0xff]  }
 0x22a   :  { %v683_v41 = vpop.f32.mrf.mxu1 }
 0x22b   :  { %v3843_v41 = vld [vmem:[%s5019_s7 + $0x128] sm:$0xff]  }
 0x22c   :  { %v684_v42 = vpop.f32.mrf.mxu1 }
 0x22d   :  { %v1657_v42 = vpack.c.bf16 %v1655_v38, %v1655_v38  ;;  %v1915_v38 = vpack.c.bf16 %v1913_v34, %v1913_v34  ;;  %v3915_v34 = vld [vmem:[%s5020_s8 + $0xe0] sm:$0xff]  }
 0x24e   :  { %v949_v43 = vpop.f32.mrf.mxu1 }
 0x24f   :  { %v955_v45 = vadd.f32 %v949_v43, %v820_v40  ;;  %v1416_v40 = vpack.c.bf16 %v1414_v36, %v1414_v36  ;;  %v1548_v43 = vrot.slane %v1392_v37, 1  ;;  %v2180_v36 = vld [vmem:[#allocation2 + $0x18] sm:$0xc0]  ;;  %v3882_v37 = vld [vmem:[%s5019_s7 + $0x180] sm:$0xff]  }
 0x250   :  { %v951_v46 = vpop.f32.mrf.mxu1 }
 0x251   :  { %v963_v47 = vadd.f32 %v3290_v44, %v955_v45  ;;  %v1788_v44 = vpack.c.bf16 %v4299_v31, %v4299_v31  ;;  %v3844_v45 = vld [vmem:[%s5019_s7 + $0xd8] sm:$0xff]   ;;  %v1440_v46 = vrot.slane %v1416_v40, 2  ;;  %v3846_v31 = vld [vmem:[%s5019_s7 + $0xd0] sm:$0xff]   ;;  %v2182_v40 = vpack.c.bf16 %v2180_v36, %v2180_v36 }
 0x252   :  { %v952_v48 = vpop.f32.mrf.mxu1 }
 0x253   :  { %v4411_v51 = vpack.c.bf16 %v963_v47, %v963_v47  ;;  %v1681_v47 = vrot.slane %v1657_v42, 3  ;;  %v3845_v48 = vld [vmem:[%s5019_s7 + $0x120] sm:$0xff]   ;;  %v2313_v42 = vpack.c.bf16 %v4297_v27, %v4297_v27  ;;  %v3886_v27 = vld [vmem:[%s5019_s7 + $0x210] sm:$0xff]  }
 0x254   :  { %v953_v52 = vpop.f32.mrf.mxu1 }
 0x255   :  { %3639 = vmatmul.mubr.bf16.vlgmr.msra.gmra.mxu1 %v4411_v51  ;;  %v998_v54 = vrot.slane %v4411_v51, 1  ;;  %v1299_v11 = vrot.slane %v4411_v51, 3  ;;  %v1192_v14 = vrot.slane %v4411_v51, 2  ;;  %v3848_v51 = vld [vmem:[%s5019_s7 + $0xc8] sm:$0xff]   ;;  %v3849_v52 = vld [vmem:[%s5019_s7 + $0x110] sm:$0xff]  }
 0x256   :  { %3663 = vmatpush3.bf16.msra.mxu1 %v3807_v49  ;;  %3678 = vmatprep.mubr.msk.bf16.mxu1 %vm4021_vm5, %v4020_v50  ;;  %v3847_v49 = vld [vmem:[%s5019_s7 + $0x118] sm:$0xff]  }
 0x257   :  { %3619 = vmatmul.mubr.bf16.vlgmr.msra.gmra.mxu0 %v998_v54  ;;  %3664 = vmatprep.subr.bf16.mxu1 %v4020_v50  ;;  %v3851_v54 = vld [vmem:[%s5019_s7 + $0x108] sm:$0xff]  }
 0x258   :  { %3643 = vmatpush3.bf16.msra.mxu0 %v3808_v53  ;;  %3658 = vmatprep.mubr.msk.bf16.mxu0 %vm4021_vm5, %v4020_v50  ;;  %v3850_v53 = vld [vmem:[%s5019_s7 + $0xc0] sm:$0xff]  }
 0x259   :  { %3644 = vmatprep.subr.bf16.mxu0 %v4020_v50 }
 0x25a   :  { %3665 = vmatpush3.bf16.msra.mxu1 %v3809_v55  ;;  %v3852_v55 = vld [vmem:[%s5019_s7 + $0xb8] sm:$0xff]  }
 0x25b   :  { %3666 = vmatprep.subr.bf16.mxu1 %v4020_v50 }
 0x25c   :  { %3645 = vmatpush3.bf16.msra.mxu0 %v3810_v56  ;;  %v3853_v56 = vld [vmem:[%s5019_s7 + $0x100] sm:$0xff]  }
 0x25d   :  { %3646 = vmatprep.subr.bf16.mxu0 %v4020_v50 }
 0x25e   :  { %3667 = vmatpush3.bf16.msra.mxu1 %v3811_v57  ;;  %v3854_v57 = vld [vmem:[%s5019_s7 + $0xb0] sm:$0xff]  }
 0x25f   :  { %3668 = vmatprep.subr.bf16.mxu1 %v4020_v50 }
 0x260   :  { %3647 = vmatpush3.bf16.msra.mxu0 %v3812_v58  ;;  %v3855_v58 = vld [vmem:[%s5019_s7 + $0xf8] sm:$0xff]  }
 0x261   :  { %3648 = vmatprep.subr.bf16.mxu0 %v4020_v50 }
 0x262   :  { %3669 = vmatpush3.bf16.msra.mxu1 %v3813_v59  ;;  %v3856_v59 = vld [vmem:[%s5019_s7 + $0xa8] sm:$0xff]  }
 0x263   :  { %3670 = vmatprep.subr.bf16.mxu1 %v4020_v50 }
 0x264   :  { %3649 = vmatpush3.bf16.msra.mxu0 %v3814_v60  ;;  %v3857_v60 = vld [vmem:[%s5019_s7 + $0xf0] sm:$0xff]  }
 0x265   :  { %3650 = vmatprep.subr.bf16.mxu0 %v4020_v50 }
 0x266   :  { %3671 = vmatpush3.bf16.msra.mxu1 %v3815_v61  ;;  %v3858_v61 = vld [vmem:[%s5019_s7 + $0xa0] sm:$0xff]  }
 0x267   :  { %3672 = vmatprep.subr.bf16.mxu1 %v4020_v50 }
 0x268   :  { %3651 = vmatpush3.bf16.msra.mxu0 %v3816_v62  ;;  %v3859_v62 = vld [vmem:[%s5019_s7 + $0x138] sm:$0xff]  }
 0x269   :  { %3652 = vmatprep.subr.bf16.mxu0 %v4020_v50 }
 0x26a   :  { %3673 = vmatpush3.bf16.msra.mxu1 %v3817_v63  ;;  %v3860_v63 = vld [vmem:[%s5019_s7 + $0xe8] sm:$0xff]  }
 0x26b   :  { %3674 = vmatprep.subr.bf16.mxu1 %v4020_v50 }
 0x26c   :  { %3653 = vmatpush3.bf16.msra.mxu0 %v3818_v1  ;;  %v2047_v1 = vld [vmem:[#allocation2 + $0x18] sm:$0x30] }
 0x26d   :  { %3654 = vmatprep.subr.bf16.mxu0 %v4020_v50  ;;  %v2049_v6 = vpack.c.bf16 %v2047_v1, %v2047_v1  ;;  %v3897_v1 = vld [vmem:[%s5019_s7 + $0x230] sm:$0xff]  }
 0x26e   :  { %3675 = vmatpush3.bf16.msra.mxu1 %v3819_v2  ;;  %v3861_v2 = vld [vmem:[%s5019_s7 + $0x130] sm:$0xff]  }
 0x26f   :  { %3676 = vmatprep.subr.bf16.mxu1 %v4020_v50 }
 0x270   :  { %3655 = vmatpush3.bf16.msra.mxu0 %v3820_v3  ;;  %v1654_v3 = vld [vmem:[#allocation2] sm:$0xc0] }
 0x271   :  { %3656 = vmatprep.subr.bf16.mxu0 %v4020_v50  ;;  %v1441_v50 = vrot.slane %v1417_v10, 2  ;;  %v1787_v10 = vpack.c.bf16 %v4295_v26, %v4295_v26  ;;  %v3865_v26 = vld [vmem:[%s5019_s7 + $0x1c0] sm:$0xff]  }
 0x272   :  { %3677 = vmatpush3.bf16.msra.mxu1 %v3821_v5  ;;  %v3862_v5 = vld [vmem:[%s5019_s7 + $0xe0] sm:$0xff]  }
 0x273   :  { %1614 = vmatprep.subr.bf16.mxu1 %v4019_v0 }
 0x274   :  { %3657 = vmatpush3.bf16.msra.mxu0 %v3822_v7  ;;  %v1656_v7 = vpack.c.bf16 %v1654_v3, %v1654_v3  ;;  %v3898_v3 = vld [vmem:[%s5019_s7 + $0x1e0] sm:$0xff]  }
 0x275   :  { %3679 = vmatmul.mubr.bf16.vlgmr.msra.gmra.mxu1 %v1299_v11  ;;  %1506 = vmatprep.subr.bf16.mxu0 %v4019_v0  ;;  %v2073_v11 = vrot.slane %v2049_v6, 2  ;;  %v3900_v6 = vld [vmem:[%s5019_s7 + $0x228] sm:$0xff]  }
 0x276   :  { %1615 = vmatpush1.bf16.msra.mxu1 %v3823_v9  ;;  %3344 = vmatprep.mubr.msk.bf16.mxu1 %vm303_vm0, %v1549_v12  ;;  %v1916_v9 = vpack.c.bf16 %v1914_v4, %v1914_v4  ;;  %v3864_v12 = vld [vmem:[%s5019_s7 + $0x178] sm:$0xff]  }
 0x277   :  { %3659 = vmatmul.mubr.bf16.vlgmr.msra.gmra.mxu0 %v1192_v14  ;;  %1616 = vmatprep.subr.bf16.mxu1 %v4019_v0  ;;  %v3899_v4 = vld [vmem:[%s5019_s7 + $0x278] sm:$0xff]  }
 0x278   :  { %1507 = vmatpush1.bf16.msra.mxu0 %v3824_v13  ;;  %3333 = vmatprep.mubr.msk.bf16.mxu0 %vm303_vm0, %v1441_v50  ;;  %v1680_v13 = vrot.slane %v1656_v7, 3  ;;  %v1940_v14 = vrot.slane %v1916_v9, 1  ;;  %v3866_v50 = vld [vmem:[%s5019_s7 + $0x170] sm:$0xff]  }
 0x279   :  { %1508 = vmatprep.subr.bf16.mxu0 %v4019_v0  ;;  %v3901_v7 = vld [vmem:[%s5019_s7 + $0x270] sm:$0xff]  }
 0x27a   :  { %1617 = vmatpush1.bf16.msra.mxu1 %v3825_v15  ;;  %v3867_v15 = vld [vmem:[%s5019_s7 + $0x1b8] sm:$0xff]  }
 0x27b   :  { %1618 = vmatprep.subr.bf16.mxu1 %v4019_v0 }
 0x27c   :  { %1509 = vmatpush1.bf16.msra.mxu0 %v3826_v16  ;;  %v3868_v16 = vld [vmem:[%s5019_s7 + $0x168] sm:$0xff]  }
 0x27d   :  { %1510 = vmatprep.subr.bf16.mxu0 %v4019_v0 }
 0x27e   :  { %1619 = vmatpush1.bf16.msra.mxu1 %v3827_v17  ;;  %v3869_v17 = vld [vmem:[%s5019_s7 + $0x1b0] sm:$0xff]  }
 0x27f   :  { %1620 = vmatprep.subr.bf16.mxu1 %v4019_v0 }
 0x280   :  { %1511 = vmatpush1.bf16.msra.mxu0 %v3828_v18  ;;  %v3870_v18 = vld [vmem:[%s5019_s7 + $0x160] sm:$0xff]  }
 0x281   :  { %1512 = vmatprep.subr.bf16.mxu0 %v4019_v0 }
 0x282   :  { %1621 = vmatpush1.bf16.msra.mxu1 %v3829_v19  ;;  %v3871_v19 = vld [vmem:[%s5019_s7 + $0x1a8] sm:$0xff]  }
 0x283   :  { %1622 = vmatprep.subr.bf16.mxu1 %v4019_v0 }
 0x284   :  { %1513 = vmatpush1.bf16.msra.mxu0 %v3830_v20  ;;  %v3872_v20 = vld [vmem:[%s5019_s7 + $0x158] sm:$0xff]  }
 0x285   :  { %1514 = vmatprep.subr.bf16.mxu0 %v4019_v0 }
 0x286   :  { %1623 = vmatpush1.bf16.msra.mxu1 %v3831_v21  ;;  %v3873_v21 = vld [vmem:[%s5019_s7 + $0x1a0] sm:$0xff]  }
 0x287   :  { %1624 = vmatprep.subr.bf16.mxu1 %v4019_v0 }
 0x288   :  { %1515 = vmatpush1.bf16.msra.mxu0 %v3832_v22  ;;  %v3874_v22 = vld [vmem:[%s5019_s7 + $0x150] sm:$0xff]  }
 0x289   :  { %1516 = vmatprep.subr.bf16.mxu0 %v4019_v0 }
 0x28a   :  { %1625 = vmatpush1.bf16.msra.mxu1 %v3833_v23  ;;  %v3875_v23 = vld [vmem:[%s5019_s7 + $0x198] sm:$0xff]  }
 0x28b   :  { %1626 = vmatprep.subr.bf16.mxu1 %v4019_v0 }
 0x28c   :  { %1517 = vmatpush1.bf16.msra.mxu0 %v3834_v24  ;;  %v3876_v24 = vld [vmem:[%s5019_s7 + $0x148] sm:$0xff]  }
 0x28d   :  { %1518 = vmatprep.subr.bf16.mxu0 %v4019_v0 }
 0x28e   :  { %1627 = vmatpush1.bf16.msra.mxu1 %v3835_v25  ;;  %v3877_v25 = vld [vmem:[%s5019_s7 + $0x190] sm:$0xff]  }
 0x28f   :  { %1628 = vmatprep.subr.bf16.mxu1 %v4019_v0 }
 0x290   :  { %1519 = vmatpush1.bf16.msra.mxu0 %v3836_v28  ;;  %v3878_v28 = vld [vmem:[%s5019_s7 + $0x140] sm:$0xff]  }
 0x291   :  { %1520 = vmatprep.subr.bf16.mxu0 %v4019_v0 }
 0x292   :  { %1629 = vmatpush1.bf16.msra.mxu1 %v3837_v29  ;;  %v3879_v29 = vld [vmem:[%s5019_s7 + $0x1d8] sm:$0xff]  }
 0x293   :  { %1642 = vmatprep.subr.bf16.mxu1 %v4019_v0 }
 0x294   :  { %1521 = vmatpush1.bf16.msra.mxu0 %v3838_v30  ;;  %v3880_v30 = vld [vmem:[%s5019_s7 + $0x188] sm:$0xff]  }
 0x295   :  { %1534 = vmatprep.subr.bf16.mxu0 %v4019_v0 }
 0x296   :  { %1643 = vmatpush2.bf16.msra.mxu1 %v3839_v32  ;;  %v2046_v32 = vld [vmem:[#allocation2 + $0x10] sm:$0x30] }
 0x297   :  { %1644 = vmatprep.subr.bf16.mxu1 %v4019_v0 }
 0x298   :  { %1535 = vmatpush2.bf16.msra.mxu0 %v3840_v33  ;;  %v3881_v33 = vld [vmem:[%s5019_s7 + $0x1d0] sm:$0xff]  }
 0x299   :  { %1536 = vmatprep.subr.bf16.mxu0 %v4019_v0 }
 0x29a   :  { %1645 = vmatpush2.bf16.msra.mxu1 %v3841_v35  ;;  %v2048_v35 = vpack.c.bf16 %v2046_v32, %v2046_v32 }
 0x29b   :  { %1872 = vmatprep.subr.bf16.mxu1 %v4019_v0 }
 0x29c   :  { %1537 = vmatpush2.bf16.msra.mxu0 %v3842_v39  ;;  %v3883_v39 = vld [vmem:[%s5019_s7 + $0x268] sm:$0xff]  }
 0x29d   :  { %1647 = vmatmul.mubr.bf16.vlgmr.msra.gmra.mxu1 %v1548_v43  ;;  %1746 = vmatprep.subr.bf16.mxu0 %v4019_v0  ;;  %v3884_v43 = vld [vmem:[%s5019_s7 + $0x218] sm:$0xff]  }
 0x29e   :  { %1873 = vmatpush1.bf16.msra.mxu1 %v3843_v41  ;;  %3366 = vmatprep.mubr.msk.bf16.mxu1 %vm303_vm0, %v1788_v44  ;;  %v2072_v41 = vrot.slane %v2048_v35, 2  ;;  %v1939_v44 = vrot.slane %v1915_v38, 1  ;;  %v3914_v35 = vld [vmem:[%s5020_s8 + $0x28] sm:$0xff]   ;;  %v3916_v38 = vld [vmem:[%s5020_s8 + $0xa0] sm:$0xff]  }
 0x29f   :  { %1539 = vmatmul.mubr.bf16.vlgmr.msra.gmra.mxu0 %v1440_v46  ;;  %1874 = vmatprep.subr.bf16.mxu1 %v4019_v0  ;;  %v3885_v46 = vld [vmem:[%s5019_s7 + $0x260] sm:$0xff]  }
 0x2a0   :  { %1747 = vmatpush1.bf16.msra.mxu0 %v3844_v45  ;;  %3355 = vmatprep.mubr.msk.bf16.mxu0 %vm303_vm0, %v1681_v47  ;;  %v2206_v45 = vrot.slane %v2182_v40, 3  ;;  %v3887_v47 = vld [vmem:[%s5019_s7 + $0x258] sm:$0xff]   ;;  %v3918_v40 = vld [vmem:[%s5020_s8 + $0x20] sm:$0xff]  }
 0x2a1   :  { %1748 = vmatprep.subr.bf16.mxu0 %v4019_v0 }
 0x2a2   :  { %1875 = vmatpush1.bf16.msra.mxu1 %v3845_v48  ;;  %v3888_v48 = vld [vmem:[%s5019_s7 + $0x208] sm:$0xff]  }
 0x2a3   :  { %1876 = vmatprep.subr.bf16.mxu1 %v4019_v0 }
 0x2a4   :  { %1749 = vmatpush1.bf16.msra.mxu0 %v3846_v31  ;;  %v3889_v31 = vld [vmem:[%s5019_s7 + $0x250] sm:$0xff]  }
 0x2a5   :  { %1750 = vmatprep.subr.bf16.mxu0 %v4019_v0 }
 0x2a6   :  { %1877 = vmatpush1.bf16.msra.mxu1 %v3847_v49  ;;  %v3890_v49 = vld [vmem:[%s5019_s7 + $0x200] sm:$0xff]  }
 0x2a7   :  { %1878 = vmatprep.subr.bf16.mxu1 %v4019_v0 }
 0x2a8   :  { %1751 = vmatpush1.bf16.msra.mxu0 %v3848_v51  ;;  %v3891_v51 = vld [vmem:[%s5019_s7 + $0x248] sm:$0xff]  }
 0x2a9   :  { %1752 = vmatprep.subr.bf16.mxu0 %v4019_v0 }
 0x2aa   :  { %1879 = vmatpush1.bf16.msra.mxu1 %v3849_v52  ;;  %v4022_v52 = vmov 1966171168  }
 0x2ab   :  { %1880 = vmatprep.subr.bf16.mxu1 %v4019_v0 }
 0x2ac   :  { %1753 = vmatpush1.bf16.msra.mxu0 %v3850_v53  ;;  %v2595_v53 = vunpack.c.l.s4 %v4022_v52 }
 0x2ad   :  { %1754 = vmatprep.subr.bf16.mxu0 %v4019_v0 }
 0x2ae   :  { %1881 = vmatpush1.bf16.msra.mxu1 %v3851_v54  ;;  %v2597_v54 = vlaneseq }
 0x2af   :  { %1882 = vmatprep.subr.bf16.mxu1 %v4019_v0 }
 0x2b0   :  { %1755 = vmatpush1.bf16.msra.mxu0 %v3852_v55  ;;  %v3892_v55 = vld [vmem:[%s5019_s7 + $0x1f8] sm:$0xff]  }
 0x2b1   :  { %1756 = vmatprep.subr.bf16.mxu0 %v4019_v0 }
 0x2b2   :  { %1883 = vmatpush1.bf16.msra.mxu1 %v3853_v56  ;;  %v3893_v56 = vld [vmem:[%s5019_s7 + $0x240] sm:$0xff]  }
 0x2b3   :  { %1884 = vmatprep.subr.bf16.mxu1 %v4019_v0 }
 0x2b4   :  { %1757 = vmatpush1.bf16.msra.mxu0 %v3854_v57  ;;  %v2596_v57 = vunpack.c.0.s8 %v2595_v53  ;;  %v3931_v53 = vld [vmem:[%s5020_s8 + $0xc0] sm:$0xff]  }
 0x2b5   :  { %1758 = vmatprep.subr.bf16.mxu0 %v4019_v0 }
 0x2b6   :  { %1885 = vmatpush1.bf16.msra.mxu1 %v3855_v58  ;;  %v2598_v58 = vshrl.u32 %v2597_v54, 7  ;;  %v3930_v54 = vld [vmem:[%s5020_s8 + $0x8] sm:$0xff]  }
 0x2b7   :  { %1886 = vmatprep.subr.bf16.mxu1 %v4019_v0 }
 0x2b8   :  { %1759 = vmatpush1.bf16.msra.mxu0 %v3856_v59  ;;  %v3894_v59 = vld [vmem:[%s5019_s7 + $0x1f0] sm:$0xff]  }
 0x2b9   :  { %1760 = vmatprep.subr.bf16.mxu0 %v4019_v0 }
 0x2ba   :  { %1887 = vmatpush1.bf16.msra.mxu1 %v3857_v60  ;;  %v3895_v60 = vld [vmem:[%s5019_s7 + $0x238] sm:$0xff]  }
 0x2bb   :  { %1900 = vmatprep.subr.bf16.mxu1 %v4019_v0 }
 0x2bc   :  { %1761 = vmatpush1.bf16.msra.mxu0 %v3858_v61  ;;  %v4740_v61 = vsub.s32 %v2596_v57, %v2598_v58  ;;  %v3932_v57 = vld [vmem:[%s5020_s8 + $0x80] sm:$0xff]  }
 0x2bd   :  { %1774 = vmatprep.subr.bf16.mxu0 %v4019_v0 }
 0x2be   :  { %1901 = vmatpush2.bf16.msra.mxu1 %v3859_v62  ;;  %v4746_v62 = vld [vmem:[%s5013_s1] sm:$0xff] }
 0x2bf   :  { %1902 = vmatprep.subr.bf16.mxu1 %v4019_v0 }
 0x2c0   :  { %1775 = vmatpush2.bf16.msra.mxu0 %v3860_v63  ;;  %v3896_v63 = vld [vmem:[%s5019_s7 + $0x1e8] sm:$0xff]  }
 0x2c1   :  { %1776 = vmatprep.subr.bf16.mxu0 %v4019_v0 }
 0x2c2   :  { %1903 = vmatpush2.bf16.msra.mxu1 %v3861_v2  ;;  %v4757_v2 = vrot.slane %v4746_v62, %v4740_v61 }
 0x2c3   :  { %2138 = vmatprep.subr.bf16.mxu1 %v4019_v0 }
 0x2c4   :  { %1777 = vmatpush2.bf16.msra.mxu0 %v3862_v5  ;;  %v2608_v5 = vcombine.high %v4757_v2, %v4757_v2 }
 0x2c5   :  { %1905 = vmatmul.mubr.bf16.vlgmr.msra.gmra.mxu1 %v1787_v10  ;;  %2005 = vmatprep.subr.bf16.mxu0 %v4019_v0  ;;  %v3903_v10 = vld [vmem:[%s5020_s8 + $0xf8] sm:$0xff]  }
 0x2c6   :  { %2139 = vmatpush1.bf16.msra.mxu1 %v3863_v8  ;;  %3388 = vmatprep.mubr.msk.bf16.mxu1 %vm303_vm0, %v2073_v11  ;;  %v2179_v8 = vld [vmem:[#allocation2 + $0x10] sm:$0xc0]  ;;  %v2630_v9 = vrot.slane %v2608_v5, %v4740_v61  ;;  %v3902_v11 = vld [vmem:[%s5019_s7 + $0x220] sm:$0xff]  }
 0x2c7   :  { %1779 = vmatmul.mubr.bf16.vlgmr.msra.gmra.mxu0 %v1680_v13  ;;  %2140 = vmatprep.subr.bf16.mxu1 %v4019_v0  ;;  %v3905_v13 = vld [vmem:[%s5020_s8 + $0x78] sm:$0xff]  }
 0x2c8   :  { %2006 = vmatpush1.bf16.msra.mxu0 %v3864_v12  ;;  %3377 = vmatprep.mubr.msk.bf16.mxu0 %vm303_vm0, %v1940_v14  ;;  %v2181_v12 = vpack.c.bf16 %v2179_v8, %v2179_v8  ;;  %v3904_v14 = vld [vmem:[%s5020_s8 + $0xb8] sm:$0xff]   ;;  %v3940_v8 = vld [vmem:[%s5020_s8 + $0x1b0] sm:$0xff]  }
 0x2c9   :  { %2007 = vmatprep.subr.bf16.mxu0 %v4019_v0 }
 0x2ca   :  { %2141 = vmatpush1.bf16.msra.mxu1 %v3865_v26  ;;  %v2640_v26 = vcombine.high %v2630_v9, %v2630_v9 }
 0x2cb   :  { %2142 = vmatprep.subr.bf16.mxu1 %v4019_v0 }
 0x2cc   :  { %2008 = vmatpush1.bf16.msra.mxu0 %v3866_v50  ;;  %v3968_v50 = vld [vmem:[#allocation2 + $0x20] sm:$0x3] }
 0x2cd   :  { %2009 = vmatprep.subr.bf16.mxu0 %v4019_v0 }
 0x2ce   :  { %2143 = vmatpush1.bf16.msra.mxu1 %v3867_v15  ;;  %v2312_v15 = vpack.c.bf16 %v3968_v50, %v3968_v50 }
 0x2cf   :  { %2144 = vmatprep.subr.bf16.mxu1 %v4019_v0 }
 0x2d0   :  { %2010 = vmatpush1.bf16.msra.mxu0 %v3868_v16  ;;  %v3907_v16 = vld [vmem:[%s5020_s8 + $0xf0] sm:$0xff]  }
 0x2d1   :  { %2011 = vmatprep.subr.bf16.mxu0 %v4019_v0 }
 0x2d2   :  { %2145 = vmatpush1.bf16.msra.mxu1 %v3869_v17 }
 0x2d3   :  { %2146 = vmatprep.subr.bf16.mxu1 %v4019_v0 }
 0x2d4   :  { %2012 = vmatpush1.bf16.msra.mxu0 %v3870_v18  ;;  %v2205_v18 = vrot.slane %v2181_v12, 3 }
 0x2d5   :  { %2013 = vmatprep.subr.bf16.mxu0 %v4019_v0 }
 0x2d6   :  { %2147 = vmatpush1.bf16.msra.mxu1 %v3871_v19  ;;  %v3909_v19 = vld [vmem:[%s5020_s8 + $0x70] sm:$0xff]  }
 0x2d7   :  { %2148 = vmatprep.subr.bf16.mxu1 %v4019_v0 }
 0x2d8   :  { %2014 = vmatpush1.bf16.msra.mxu0 %v3872_v20  ;;  %v3908_v20 = vld [vmem:[%s5020_s8 + $0xb0] sm:$0xff]  }
 0x2d9   :  { %2015 = vmatprep.subr.bf16.mxu0 %v4019_v0 }
 0x2da   :  { %2149 = vmatpush1.bf16.msra.mxu1 %v3873_v21 }
 0x2db   :  { %2150 = vmatprep.subr.bf16.mxu1 %v4019_v0 }
 0x2dc   :  { %2016 = vmatpush1.bf16.msra.mxu0 %v3874_v22 }
 0x2dd   :  { %2017 = vmatprep.subr.bf16.mxu0 %v4019_v0 }
 0x2de   :  { %2151 = vmatpush1.bf16.msra.mxu1 %v3875_v23  ;;  %v3911_v23 = vld [vmem:[%s5020_s8 + $0xe8] sm:$0xff]  }
 0x2df   :  { %2152 = vmatprep.subr.bf16.mxu1 %v4019_v0 }
 0x2e0   :  { %2018 = vmatpush1.bf16.msra.mxu0 %v3876_v24  ;;  %v3910_v24 = vld [vmem:[%s5020_s8 + $0x30] sm:$0xff]  }
 0x2e1   :  { %2019 = vmatprep.subr.bf16.mxu0 %v4019_v0 }
 0x2e2   :  { %2153 = vmatpush1.bf16.msra.mxu1 %v3877_v25 }
 0x2e3   :  { %2166 = vmatprep.subr.bf16.mxu1 %v4019_v0 }
 0x2e4   :  { %2020 = vmatpush1.bf16.msra.mxu0 %v3878_v28 }
 0x2e5   :  { %2033 = vmatprep.subr.bf16.mxu0 %v4019_v0 }
 0x2e6   :  { %2167 = vmatpush2.bf16.msra.mxu1 %v3879_v29  ;;  %v3913_v29 = vld [vmem:[%s5020_s8 + $0x68] sm:$0xff]  }
 0x2e7   :  { %2168 = vmatprep.subr.bf16.mxu1 %v4019_v0 }
 0x2e8   :  { %2034 = vmatpush2.bf16.msra.mxu0 %v3880_v30  ;;  %v3912_v30 = vld [vmem:[%s5020_s8 + $0xa8] sm:$0xff]  }
 0x2e9   :  { %2035 = vmatprep.subr.bf16.mxu0 %v4019_v0 }
 0x2ea   :  { %2169 = vmatpush2.bf16.msra.mxu1 %v3881_v33 }
 0x2eb   :  { %2397 = vmatprep.subr.bf16.mxu1 %v4019_v0 }
 0x2ec   :  { %2036 = vmatpush2.bf16.msra.mxu0 %v3882_v37  ;;  %v3917_v37 = vld [vmem:[%s5020_s8 + $0x60] sm:$0xff]  }
 0x2ed   :  { %2171 = vmatmul.mubr.bf16.vlgmr.msra.gmra.mxu1 %v2072_v41  ;;  %2271 = vmatprep.subr.bf16.mxu0 %v4019_v0  ;;  %v3921_v41 = vld [vmem:[%s5020_s8 + $0x58] sm:$0xff]  }
 0x2ee   :  { %2398 = vmatpush1.bf16.msra.mxu1 %v3883_v39  ;;  %3410 = vmatprep.mubr.msk.bf16.mxu1 %vm303_vm0, %v2313_v42  ;;  %v3919_v39 = vld [vmem:[%s5020_s8 + $0xd8] sm:$0xff]  }
 0x2ef   :  { %2038 = vmatmul.mubr.bf16.vlgmr.msra.gmra.mxu0 %v1939_v44  ;;  %2399 = vmatprep.subr.bf16.mxu1 %v4019_v0  ;;  %v3920_v42 = vld [vmem:[%s5020_s8 + $0x98] sm:$0xff]   ;;  %v3923_v44 = vld [vmem:[%s5020_s8 + $0xd0] sm:$0xff]  }
 0x2f0   :  { %2272 = vmatpush1.bf16.msra.mxu0 %v3884_v43  ;;  %3399 = vmatprep.mubr.msk.bf16.mxu0 %vm303_vm0, %v2206_v45  ;;  %v2593_v43 = vcombine.high %v4746_v62, %v4746_v62  ;;  %v3922_v45 = vld [vmem:[%s5020_s8 + $0x18] sm:$0xff]  }
 0x2f1   :  { %2273 = vmatprep.subr.bf16.mxu0 %v4019_v0 }
 0x2f2   :  { %2400 = vmatpush1.bf16.msra.mxu1 %v3885_v46  ;;  %v3925_v46 = vld [vmem:[%s5020_s8 + $0x50] sm:$0xff]  }
 0x2f3   :  { %2401 = vmatprep.subr.bf16.mxu1 %v4019_v0 }
 0x2f4   :  { %2274 = vmatpush1.bf16.msra.mxu0 %v3886_v27  ;;  %v3924_v27 = vld [vmem:[%s5020_s8 + $0x90] sm:$0xff]  }
 0x2f5   :  { %2275 = vmatprep.subr.bf16.mxu0 %v4019_v0 }
 0x2f6   :  { %2402 = vmatpush1.bf16.msra.mxu1 %v3887_v47  ;;  %v4859_v47 = vrot.slane %v2593_v43, %v4740_v61 }
 0x2f7   :  { %2403 = vmatprep.subr.bf16.mxu1 %v4019_v0 }
 0x2f8   :  { %2276 = vmatpush1.bf16.msra.mxu0 %v3888_v48  ;;  %v3927_v48 = vld [vmem:[%s5020_s8 + $0xc8] sm:$0xff]   ;;  %v2609_v52 = vcombine.high %v4859_v47, %v4859_v47  ;;  %v2623_v43 = vrot.slane %v4859_v47, %v4740_v61 }
 0x2f9   :  { %2277 = vmatprep.subr.bf16.mxu0 %v4019_v0 }
 0x2fa   :  { %2404 = vmatpush1.bf16.msra.mxu1 %v3889_v31  ;;  %v3926_v31 = vld [vmem:[%s5020_s8 + $0x10] sm:$0xff]   ;;  %v2637_v58 = vrot.slane %v2609_v52, %v4740_v61 }
 0x2fb   :  { %2405 = vmatprep.subr.bf16.mxu1 %v4019_v0 }
 0x2fc   :  { %2278 = vmatpush1.bf16.msra.mxu0 %v3890_v49  ;;  %v3929_v49 = vld [vmem:[%s5020_s8 + $0x48] sm:$0xff]  }
 0x2fd   :  { %2279 = vmatprep.subr.bf16.mxu0 %v4019_v0 }
 0x2fe   :  { %2406 = vmatpush1.bf16.msra.mxu1 %v3891_v51  ;;  %v3928_v51 = vld [vmem:[%s5020_s8 + $0x88] sm:$0xff]  }
 0x2ff   :  { %2407 = vmatprep.subr.bf16.mxu1 %v4019_v0 }
 0x300   :  { %2280 = vmatpush1.bf16.msra.mxu0 %v3892_v55  ;;  %v3933_v55 = vld [vmem:[%s5020_s8 + $0x40] sm:$0xff]  }
 0x301   :  { %2281 = vmatprep.subr.bf16.mxu0 %v4019_v0 }
 0x302   :  { %2408 = vmatpush1.bf16.msra.mxu1 %v3893_v56  ;;  %v2616_v56 = vrot.slane %v4757_v2, %v4740_v61  ;;  %v2641_v2 = vcombine.high %v2637_v58, %v2637_v58 }
 0x303   :  { %2409 = vmatprep.subr.bf16.mxu1 %v4019_v0 }
 0x304   :  { %2282 = vmatpush1.bf16.msra.mxu0 %v3894_v59  ;;  %v3935_v59 = vld [vmem:[%s5020_s8 + $0x1f8] sm:$0xff]   ;;  %v2638_v62 = vcombine.high %v2616_v56, %v2616_v56 }
 0x305   :  { %2283 = vmatprep.subr.bf16.mxu0 %v4019_v0 }
 0x306   :  { %2410 = vmatpush1.bf16.msra.mxu1 %v3895_v60  ;;  %v3934_v60 = vld [vmem:[%s5020_s8] sm:$0xff]  }
 0x307   :  { %2411 = vmatprep.subr.bf16.mxu1 %v4019_v0 }
 0x308   :  { %2284 = vmatpush1.bf16.msra.mxu0 %v3896_v63  ;;  %v3937_v63 = vld [vmem:[%s5020_s8 + $0x178] sm:$0xff]  }
 0x309   :  { %2285 = vmatprep.subr.bf16.mxu0 %v4019_v0 }
 0x30a   :  { %2412 = vmatpush1.bf16.msra.mxu1 %v3897_v1  ;;  %v3936_v1 = vld [vmem:[%s5020_s8 + $0x1b8] sm:$0xff]  }
 0x30b   :  { %2425 = vmatprep.subr.bf16.mxu1 %v4019_v0 }
 0x30c   :  { %2286 = vmatpush1.bf16.msra.mxu0 %v3898_v3  ;;  %v3939_v3 = vld [vmem:[%s5020_s8 + $0x1f0] sm:$0xff]  }
 0x30d   :  { %2299 = vmatprep.subr.bf16.mxu0 %v4019_v0 }
 0x30e   :  { %2426 = vmatpush2.bf16.msra.mxu1 %v3899_v4  ;;  %v3938_v4 = vld [vmem:[%s5020_s8 + $0x138] sm:$0xff]  }
 0x30f   :  { %2427 = vmatprep.subr.bf16.mxu1 %v4019_v0 }
 0x310   :  { %2300 = vmatpush2.bf16.msra.mxu0 %v3900_v6  ;;  %v3941_v6 = vld [vmem:[%s5020_s8 + $0x170] sm:$0xff]  }
 0x311   :  { %2301 = vmatprep.subr.bf16.mxu0 %v4019_v0  ;;  %v3906_v0 = vld [vmem:[%s5020_s8 + $0x38] sm:$0xff]  }
 0x312   :  { %2428 = vmatpush2.bf16.msra.mxu1 %v3901_v7 }
 0x313   :  { %3536 = vmatprep.subr.bf16.mxu1 %v3903_v10 }
 0x314   :  { %2302 = vmatpush2.bf16.msra.mxu0 %v3902_v11  ;;  %v3943_v11 = vld [vmem:[%s5020_s8 + $0x1e8] sm:$0xff]  }
 0x315   :  { %2430 = vmatmul.mubr.bf16.vlgmr.msra.gmra.mxu1 %v2312_v15  ;;  %v4798_v17 = vpop.f32.mrf.mxu1  ;;  %3514 = vmatprep.subr.bf16.mxu0 %v3905_v13  ;;  %v3942_v13 = vld [vmem:[%s5020_s8 + $0x130] sm:$0xff]   ;;  %v3945_v15 = vld [vmem:[%s5020_s8 + $0x168] sm:$0xff]  }
 0x316   :  { %3537 = vmatpush3.bf16.msra.mxu1 %v3904_v14  ;;  %3106 = vmatprep.mubr.bf16.mxu1 %v2640_v26  ;;  %v3411_v14 = vld [vmem:[%s5021_s9] ss:$0 sm:$0xff] }
 0x317   :  { %2304 = vmatmul.mubr.bf16.vlgmr.msra.gmra.mxu0 %v2205_v18  ;;  %v4806_v21 = vpop.f32.mrf.mxu0  ;;  %v3640_v22 = vpop.f32.mrf.mxu1  ;;  %3538 = vmatprep.subr.bf16.mxu1 %v3907_v16 }
 0x318   :  { %3515 = vmatpush3.bf16.msra.mxu0 %v3906_v0  ;;  %3066 = vmatprep.mubr.bf16.mxu0 %v2630_v9  ;;  %v1171_v7 = vadd.f32 %v4798_v17, %v4806_v21  ;;  %v3944_v0 = vld [vmem:[%s5020_s8 + $0x1a8] sm:$0xff]  }
 0x319   :  { %v3620_v25 = vpop.f32.mrf.mxu0  ;;  %v1173_v28 = vpop.f32.mrf.mxu1  ;;  %3516 = vmatprep.subr.bf16.mxu0 %v3909_v19  ;;  %v3947_v19 = vld [vmem:[%s5020_s8 + $0x1e0] sm:$0xff]   ;;  %v3946_v21 = vld [vmem:[%s5020_s8 + $0x128] sm:$0xff]  }
 0x31a   :  { %3539 = vmatpush3.bf16.msra.mxu1 %v3908_v20  ;;  %v3951_v25 = vld [vmem:[%s5020_s8 + $0x1d8] sm:$0xff]   ;;  %v3950_v28 = vld [vmem:[%s5020_s8 + $0x120] sm:$0xff]  }
 0x31b   :  { %v1085_v32 = vpop.f32.mrf.mxu0  ;;  %v3641_v33 = vpop.f32.mrf.mxu1  ;;  %3540 = vmatprep.subr.bf16.mxu1 %v3911_v23  ;;  %v3949_v23 = vld [vmem:[%s5020_s8 + $0x160] sm:$0xff]  }
 0x31c   :  { %3517 = vmatpush3.bf16.msra.mxu0 %v3910_v24  ;;  %v3948_v24 = vld [vmem:[%s5020_s8 + $0x1a0] sm:$0xff]   ;;  %v3955_v32 = vld [vmem:[%s5020_s8 + $0x1d0] sm:$0xff]   ;;  %v3954_v33 = vld [vmem:[%s5020_s8 + $0x118] sm:$0xff]  }
 0x31d   :  { %v3621_v36 = vpop.f32.mrf.mxu0  ;;  %3518 = vmatprep.subr.bf16.mxu0 %v3913_v29  ;;  %v3953_v29 = vld [vmem:[%s5020_s8 + $0x158] sm:$0xff]  }
 0x31e   :  { %3541 = vmatpush3.bf16.msra.mxu1 %v3912_v30  ;;  %v3952_v30 = vld [vmem:[%s5020_s8 + $0x198] sm:$0xff]   ;;  %v3959_v36 = vld [vmem:[%s5020_s8 + $0x1c8] sm:$0xff]  }
 0x31f   :  { %3542 = vmatprep.subr.bf16.mxu1 %v3915_v34  ;;  %v3957_v34 = vld [vmem:[%s5020_s8 + $0x150] sm:$0xff]  }
 0x320   :  { %3519 = vmatpush3.bf16.msra.mxu0 %v3914_v35  ;;  %v3956_v35 = vld [vmem:[%s5020_s8 + $0x190] sm:$0xff]  }
 0x321   :  { %3520 = vmatprep.subr.bf16.mxu0 %v3917_v37  ;;  %v3958_v37 = vld [vmem:[%s5020_s8 + $0x110] sm:$0xff]  }
 0x322   :  { %3543 = vmatpush3.bf16.msra.mxu1 %v3916_v38  ;;  %v3961_v38 = vld [vmem:[%s5020_s8 + $0x148] sm:$0xff]  }
 0x323   :  { %3544 = vmatprep.subr.bf16.mxu1 %v3919_v39  ;;  %v3960_v39 = vld [vmem:[%s5020_s8 + $0x188] sm:$0xff]  }
 0x324   :  { %3521 = vmatpush3.bf16.msra.mxu0 %v3918_v40  ;;  %v3963_v40 = vld [vmem:[%s5020_s8 + $0x1c0] sm:$0xff]  }
 0x325   :  { %3522 = vmatprep.subr.bf16.mxu0 %v3921_v41  ;;  %v3962_v41 = vld [vmem:[%s5020_s8 + $0x108] sm:$0xff]  }
 0x326   :  { %3545 = vmatpush3.bf16.msra.mxu1 %v3920_v42  ;;  %v3965_v42 = vld [vmem:[%s5020_s8 + $0x140] sm:$0xff]  }
 0x327   :  { %3546 = vmatprep.subr.bf16.mxu1 %v3923_v44  ;;  %v3964_v44 = vld [vmem:[%s5020_s8 + $0x180] sm:$0xff]  }
 0x328   :  { %3523 = vmatpush3.bf16.msra.mxu0 %v3922_v45  ;;  %v3966_v45 = vld [vmem:[%s5020_s8 + $0x100] sm:$0xff]  }
 0x329   :  { %3524 = vmatprep.subr.bf16.mxu0 %v3925_v46  ;;  %v2639_v46 = vcombine.high %v2623_v43, %v2623_v43 }
 0x32a   :  { %3547 = vmatpush3.bf16.msra.mxu1 %v3924_v27 }
 0x32b   :  { %3548 = vmatprep.subr.bf16.mxu1 %v3927_v48 }
 0x32c   :  { %3525 = vmatpush3.bf16.msra.mxu0 %v3926_v31 }
 0x32d   :  { %3526 = vmatprep.subr.bf16.mxu0 %v3929_v49 }
 0x32e   :  { %3549 = vmatpush3.bf16.msra.mxu1 %v3928_v51 }
 0x32f   :  { %3550 = vmatprep.subr.bf16.mxu1 %v3931_v53 }
 0x330   :  { %3527 = vmatpush3.bf16.msra.mxu0 %v3930_v54 }
 0x331   :  { %3528 = vmatprep.subr.bf16.mxu0 %v3933_v55 }
 0x332   :  { %3551 = vmatpush3.bf16.msra.mxu1 %v3932_v57 }
 0x333   :  { %3580 = vmatprep.subr.bf16.mxu1 %v3935_v59 }
 0x334   :  { %3529 = vmatpush3.bf16.msra.mxu0 %v3934_v60 }
 0x335   :  { %v1383_v5 = vpop.f32.mrf.mxu1  ;;  %3107 = vmatmul.mubr.bf16.vlgmr.msra.gmra.mxu1 %v2638_v62  ;;  %3558 = vmatprep.subr.bf16.mxu0 %v3937_v63 }
 0x336   :  { %3581 = vmatpush3.bf16.msra.mxu1 %v3936_v1  ;;  %3186 = vmatprep.mubr.bf16.mxu1 %v2641_v2 }
 0x337   :  { %v1276_v9 = vpop.f32.mrf.mxu0  ;;  %v3680_v10 = vpop.f32.mrf.mxu1  ;;  %3067 = vmatmul.mubr.bf16.vlgmr.msra.gmra.mxu0 %v2616_v56  ;;  %3582 = vmatprep.subr.bf16.mxu1 %v3939_v3 }
 0x338   :  { %v1282_v12 = vadd.f32 %v1276_v9, %v1171_v7  ;;  %3559 = vmatpush3.bf16.msra.mxu0 %v3938_v4  ;;  %3146 = vmatprep.mubr.bf16.mxu0 %v2637_v58 }
 0x339   :  { %v3660_v26 = vpop.f32.mrf.mxu0  ;;  %v1386_v50 = vpop.f32.mrf.mxu1  ;;  %3560 = vmatprep.subr.bf16.mxu0 %v3941_v6 }
 0x33a   :  { %v1389_v16 = vadd.f32 %v1383_v5, %v1282_v12  ;;  %3583 = vmatpush3.bf16.msra.mxu1 %v3940_v8 }
 0x33b   :  { %v1279_v17 = vpop.f32.mrf.mxu0  ;;  %v3681_v18 = vpop.f32.mrf.mxu1  ;;  %3584 = vmatprep.subr.bf16.mxu1 %v3943_v11 }
 0x33c   :  { %v2572_v20 = vadd.f32 %v3411_v14, %v1389_v16  ;;  %3561 = vmatpush3.bf16.msra.mxu0 %v3942_v13  ;;  %v3412_v16 = vld [vmem:[%s5021_s9 + $0x1] ss:$0 sm:$0xff] }
 0x33d   :  { %v3661_v22 = vpop.f32.mrf.mxu0  ;;  %3562 = vmatprep.subr.bf16.mxu0 %v3945_v15 }
 0x33e   :  { %3585 = vmatpush3.bf16.msra.mxu1 %v3944_v0  ;;  %2574 = vst.msk [vmem:[%s5022_s10] sm:$0x3] %vm2573_vm6, %v2572_v20 }
 0x33f   :  { %3586 = vmatprep.subr.bf16.mxu1 %v3947_v19 }
 0x340   :  { %3563 = vmatpush3.bf16.msra.mxu0 %v3946_v21 }
 0x341   :  { %3564 = vmatprep.subr.bf16.mxu0 %v3949_v23 }
 0x342   :  { %3587 = vmatpush3.bf16.msra.mxu1 %v3948_v24 }
 0x343   :  { %3588 = vmatprep.subr.bf16.mxu1 %v3951_v25 }
 0x344   :  { %3565 = vmatpush3.bf16.msra.mxu0 %v3950_v28 }
 0x345   :  { %3566 = vmatprep.subr.bf16.mxu0 %v3953_v29 }
 0x346   :  { %3589 = vmatpush3.bf16.msra.mxu1 %v3952_v30 }
 0x347   :  { %3590 = vmatprep.subr.bf16.mxu1 %v3955_v32 }
 0x348   :  { %3567 = vmatpush3.bf16.msra.mxu0 %v3954_v33  ;;  %v3413_v33 = vld [vmem:[%s5021_s9 + $0x2] ss:$0 sm:$0xff] }
 0x349   :  { %3568 = vmatprep.subr.bf16.mxu0 %v3957_v34 }
 0x34a   :  { %3591 = vmatpush3.bf16.msra.mxu1 %v3956_v35 }
 0x34b   :  { %3592 = vmatprep.subr.bf16.mxu1 %v3959_v36 }
 0x34c   :  { %3569 = vmatpush3.bf16.msra.mxu0 %v3958_v37 }
 0x34d   :  { %3570 = vmatprep.subr.bf16.mxu0 %v3961_v38 }
 0x34e   :  { %3593 = vmatpush3.bf16.msra.mxu1 %v3960_v39 }
 0x34f   :  { %3594 = vmatprep.subr.bf16.mxu1 %v3963_v40 }
 0x350   :  { %3571 = vmatpush3.bf16.msra.mxu0 %v3962_v41 }
 0x351   :  { %3572 = vmatprep.subr.bf16.mxu0 %v3965_v42 }
 0x352   :  { %3595 = vmatpush3.bf16.msra.mxu1 %v3964_v44 }
 0x354   :  { %3573 = vmatpush3.bf16.msra.mxu0 %v3966_v45 }
 0x355   :  { %3187 = vmatmul.mubr.bf16.vlgmr.msra.gmra.mxu1 %v2639_v46 }
 0x357   :  { %3147 = vmatmul.mubr.bf16.vlgmr.msra.gmra.mxu0 %v2623_v43 }
 0x35d   :  { %v1648_v27 = vpop.f32.mrf.mxu1 }
 0x35f   :  { %v1540_v48 = vpop.f32.mrf.mxu0  ;;  %v1650_v61 = vpop.f32.mrf.mxu1 }
 0x360   :  { %v1649_v47 = vadd.f32 %v1648_v27, %v1540_v48 }
 0x361   :  { %v1542_v31 = vpop.f32.mrf.mxu0  ;;  %v1651_v49 = vpop.f32.mrf.mxu1 }
 0x363   :  { %v1543_v51 = vpop.f32.mrf.mxu0  ;;  %v1652_v52 = vpop.f32.mrf.mxu1 }
 0x365   :  { %v1544_v53 = vpop.f32.mrf.mxu0 }
 0x385   :  { %v1906_v54 = vpop.f32.mrf.mxu1 }
 0x387   :  { %v1780_v55 = vpop.f32.mrf.mxu0  ;;  %v1908_v56 = vpop.f32.mrf.mxu1 }
 0x388   :  { %v1786_v57 = vadd.f32 %v1780_v55, %v1649_v47 }
 0x389   :  { %v1782_v58 = vpop.f32.mrf.mxu0  ;;  %v1909_v59 = vpop.f32.mrf.mxu1 }
 0x38a   :  { %v1912_v60 = vadd.f32 %v1906_v54, %v1786_v57 }
 0x38b   :  { %v1783_v62 = vpop.f32.mrf.mxu0  ;;  %v1910_v63 = vpop.f32.mrf.mxu1 }
 0x38d   :  { %v1784_v1 = vpop.f32.mrf.mxu0 }
 0x3ad   :  { %v2172_v2 = vpop.f32.mrf.mxu1 }
 0x3af   :  { %v2039_v3 = vpop.f32.mrf.mxu0  ;;  %v2174_v4 = vpop.f32.mrf.mxu1 }
 0x3b0   :  { %v2045_v10 = vadd.f32 %v2039_v3, %v1912_v60 }
 0x3b1   :  { %v2041_v5 = vpop.f32.mrf.mxu0  ;;  %v2175_v6 = vpop.f32.mrf.mxu1 }
 0x3b2   :  { %v2178_v12 = vadd.f32 %v2172_v2, %v2045_v10 }
 0x3b3   :  { %v2042_v7 = vpop.f32.mrf.mxu0  ;;  %v2176_v8 = vpop.f32.mrf.mxu1 }
 0x3b5   :  { %v2043_v9 = vpop.f32.mrf.mxu0 }
 0x3d5   :  { %v2431_v11 = vpop.f32.mrf.mxu1 }
 0x3d7   :  { %v2305_v13 = vpop.f32.mrf.mxu0  ;;  %v2433_v14 = vpop.f32.mrf.mxu1 }
 0x3d8   :  { %v2311_v26 = vadd.f32 %v2305_v13, %v2178_v12 }
 0x3d9   :  { %v2307_v50 = vpop.f32.mrf.mxu0  ;;  %v2434_v15 = vpop.f32.mrf.mxu1 }
 0x3da   :  { %v2437_v0 = vadd.f32 %v2431_v11, %v2311_v26 }
 0x3db   :  { %v2308_v17 = vpop.f32.mrf.mxu0  ;;  %v2435_v18 = vpop.f32.mrf.mxu1 }
 0x3dc   :  { %v2580_v19 = vadd.f32 %v3412_v16, %v2437_v0 }
 0x3dd   :  { %v2309_v20 = vpop.f32.mrf.mxu0 }
 0x3de   :  { %2582 = vrot.lane.b32.xlu0 %v2580_v19, %s4015_s17  ;;  %s4023_s17 = smov 32  }
 0x3f5   :  { %v3552_v21 = vpop.f32.mrf.mxu1 }
 0x3f7   :  { %v3530_v22 = vpop.f32.mrf.mxu0  ;;  %v3553_v23 = vpop.f32.mrf.mxu1 }
 0x3f8   :  { %v3554_v35 = vadd.f32 %v3553_v23, %v3552_v21 }
 0x3f9   :  { %v3531_v24 = vpop.f32.mrf.mxu0  ;;  %v3555_v25 = vpop.f32.mrf.mxu1 }
 0x3fa   :  { %v3532_v32 = vadd.f32 %v3531_v24, %v3530_v22 }
 0x3fb   :  { %v3533_v28 = vpop.f32.mrf.mxu0  ;;  %v3556_v29 = vpop.f32.mrf.mxu1 }
 0x3fc   :  { %v3069_v36 = vadd.f32 %v3532_v32, %v3413_v33 }
 0x3fd   :  { %v3534_v30 = vpop.f32.mrf.mxu0 }
 0x3fe   :  { %v3109_v41 = vadd.f32 %v3554_v35, %v3069_v36 }
 0x415   :  { %v3596_v34 = vpop.f32.mrf.mxu1 }
 0x417   :  { %v3574_v37 = vpop.f32.mrf.mxu0  ;;  %v3597_v38 = vpop.f32.mrf.mxu1 }
 0x418   :  { %v3598_v45 = vadd.f32 %v3597_v38, %v3596_v34 }
 0x419   :  { %v3575_v39 = vpop.f32.mrf.mxu0  ;;  %v3599_v40 = vpop.f32.mrf.mxu1 }
 0x41a   :  { %v3576_v42 = vadd.f32 %v3575_v39, %v3574_v37 }
 0x41b   :  { %v3577_v43 = vpop.f32.mrf.mxu0  ;;  %v3600_v44 = vpop.f32.mrf.mxu1 }
 0x41c   :  { %v3149_v46 = vadd.f32 %v3576_v42, %v3109_v41 }
 0x41d   :  { %v3578_v27 = vpop.f32.mrf.mxu0 }
 0x41e   :  { %v3189_v48 = vadd.f32 %v3598_v45, %v3149_v46 }
 0x420   :  { %3195 = vrot.lane.b32.xlu0 %v3189_v48, %s4023_s17 }
 0x450   :  { %v2583_v61 = vpop.permute.xlu0 %2582 }
 0x451   :  { %2586 = vst.msk [vmem:[%s5022_s10] sm:$0x3] %vm2585_vm7, %v2583_v61 }
 0x492   :  { %v3196_v47 = vpop.permute.xlu0 %3195 }
 0x493   :  { %3199 = vst.msk [vmem:[%s5022_s10] sm:$0x3] %vm3198_vm8, %v3196_v47 }
 0x494   :  { %3204 = vsyncpa [#allocation4], 1 }
 0x495   :  { %3205 = vsyncpa [#allocation6], 1 }

</bundles_post_ra>
